<compile_context>
chip_gen: v5e
topology: v5e:2x2
jax: 0.10.0
libtpu: 0.0.40
codegen_flags: <defaults>
</compile_context>

<pallas_src>
import jax
import jax.numpy as jnp
from jax.experimental import pallas as pl
from jax.experimental.pallas import tpu as pltpu

NUM = 256           # hidden width ("num" in the PyTorch module)
GRID_ENC = 10       # logical grid-encoder output width (torch)
GE_PAD = 16         # lane-padded grid-encoder width used in-kernel
NEG_SLOPE = 0.01    # default nn.LeakyReLU negative_slope
N_OUT_PAD = 128     # lane-dense padded output width
BIAS_ROWS = 16      # packed bias slab rows (9 used, padded to sublane multiple)
BIAS_COLS = 256     # packed bias slab cols (max layer width)
MAX_TB = 1024       # batch-tile cap (~6 KiB live VMEM per row incl. dbl-buf I/O)
VMEM_LIMIT = 48 * 1024 * 1024   # > v5e 16 MiB scoped default, < v7x 64 MiB phys


def _lrelu(x):
    # max(x, a*x) == LeakyReLU(a) for 0 < a < 1; cheaper than where() on VPU.
    return jnp.maximum(x, NEG_SLOPE * x)


def _round_up(x, m):
    return ((x + m - 1) // m) * m


def _qnet_kernel(grid_ref, tgt_ref, pos_ref,
                 wg1, wg2, wt1g, wt1t, wt1p, wt2, wt3,
                 wa1, wa2, wa3, wa4,
                 bias_ref, out_ref):
    bf16 = jnp.bfloat16

    def dot(x, w_ref):
        # bf16 x bf16 -> f32 accumulate on the MXU
        return jnp.dot(x.astype(bf16), w_ref[...],
                       preferred_element_type=jnp.float32)

    b = bias_ref[...]  # (16, 256) f32, one bias per row

    # grid encoder (output lane-padded to GE_PAD; padded lanes stay exactly 0)
    h = _lrelu(dot(grid_ref[...], wg1) + b[0:1, :])
    g = _lrelu(dot(h, wg2) + b[1:2, :GE_PAD])

    # trunk; layer 1 consumes concat([grid_enc, target, pos]) as three partial
    # matmuls against the split weight slabs (no lane-dim concat anywhere).
    t = _lrelu(dot(g, wt1g) + dot(tgt_ref[...], wt1t)
               + dot(pos_ref[...], wt1p) + b[2:3, :])
    t = _lrelu(dot(t, wt2) + b[3:4, :])
    t = _lrelu(dot(t, wt3) + b[4:5, :])

    # action_output head (last layer zero-padded to 128 lanes, bf16 store)
    a = _lrelu(dot(t, wa1) + b[5:6, :])
    a = _lrelu(dot(a, wa2) + b[6:7, :])
    a = _lrelu(dot(a, wa3) + b[7:8, :])
    out_ref[...] = (dot(a, wa4) + b[8:9, :N_OUT_PAD]).astype(out_ref.dtype)


def _choose_tile(batch):
    """Pick (batch_tile, padded_batch)."""
    if batch <= 512:
        # Single VMEM-resident tile covering the whole batch: block == full
        # batch dim, so no padding and no wasted MXU rows.
        return batch, batch
    # Large batch: tile at up to MAX_TB rows but keep >= 2 grid steps so the
    # "parallel" batch axis can be sharded across v7x's two TensorCores.
    tb = min(MAX_TB, _round_up((batch + 1) // 2, 8))
    return tb, _round_up(batch, tb)


def q_network_forward(grid_vec, target, pos, params, n_out):
    """grid_vec: (B, grid_len, grid_w); target: (B, T); pos: (B, P)."""
    B = grid_vec.shape[0]
    x_grid = grid_vec.reshape(B, -1)          # torch .flatten(-2); metadata-only
    G = x_grid.shape[1]
    T = target.shape[1]
    P = pos.shape[1]

    tb, b_pad = _choose_tile(B)
    if b_pad != B:
        pad = ((0, b_pad - B), (0, 0))
        x_grid = jnp.pad(x_grid, pad)
        target = jnp.pad(target, pad)
        pos = jnp.pad(pos, pad)
    n_steps = b_pad // tb

    weights = params[:-1]
    bias = params[-1]

    def act_spec(feat):
        return pl.BlockSpec((tb, feat), lambda i: (i, 0))

    # Constant block index -> weights/bias stay VMEM-resident across grid steps.
    w_specs = [pl.BlockSpec(w.shape, lambda i: (0, 0)) for w in weights]
    bias_spec = pl.BlockSpec(bias.shape, lambda i: (0, 0))

    flops = 2 * b_pad * (G * NUM + NUM * GE_PAD + GE_PAD * NUM
                         + (T + P) * NUM + 5 * NUM * NUM + NUM * N_OUT_PAD)
    bytes_accessed = (
        sum(int(a.size) * a.dtype.itemsize for a in (x_grid, target, pos))
        + sum(int(w.size) * w.dtype.itemsize for w in weights)
        + int(bias.size) * bias.dtype.itemsize
        + b_pad * N_OUT_PAD * 2)                       # bf16 output writes

    out = pl.pallas_call(
        _qnet_kernel,
        out_shape=jax.ShapeDtypeStruct((b_pad, N_OUT_PAD), jnp.bfloat16),
        grid=(n_steps,),
        in_specs=[act_spec(G), act_spec(T), act_spec(P)] + w_specs + [bias_spec],
        out_specs=pl.BlockSpec((tb, N_OUT_PAD), lambda i: (i, 0)),
        compiler_params=pltpu.CompilerParams(
            dimension_semantics=("parallel",),
            vmem_limit_bytes=VMEM_LIMIT),
        cost_estimate=pl.CostEstimate(
            flops=flops, transcendentals=0, bytes_accessed=bytes_accessed),
    )(x_grid, target, pos, *weights, bias)

    # Consumer-facing shape; a downstream kernel could take the padded bf16
    # (B, 128) slab directly and skip this tiny slice+cast.
    return out[:B, :n_out].astype(jnp.float32)


# ----------------------------- parameter init ------------------------------

def _xavier_uniform(key, fan_in, fan_out):
    bound = (6.0 / (fan_in + fan_out)) ** 0.5
    # stored as [in, out] (transposed relative to torch's [out, in])
    return jax.random.uniform(key, (fan_in, fan_out), jnp.float32, -bound, bound)


def make_params(key, grid_in, target_len, pos_len, n_out):
    dims = [
        (grid_in, NUM), (NUM, GRID_ENC),                                   # grid_enc
        (GRID_ENC + target_len + pos_len, NUM), (NUM, NUM), (NUM, NUM),    # trunk
        (NUM, NUM), (NUM, NUM), (NUM, NUM), (NUM, n_out),                  # action_output
    ]
    keys = jax.random.split(key, len(dims))
    ws = [_xavier_uniform(k, fi, fo) for k, (fi, fo) in zip(keys, dims)]

    # lane-pad the grid-encoder bottleneck 10 -> 16 (zero pad is inert: the
    # padded bias lanes are 0 so lrelu(0)=0, and the matching wt1g rows are 0)
    wg2 = jnp.pad(ws[1], ((0, 0), (0, GE_PAD - GRID_ENC)))

    # split trunk layer-1 weight into [grid_enc | target | pos] slabs
    wt1 = ws[2]
    wt1g = jnp.zeros((GE_PAD, NUM), jnp.float32).at[:GRID_ENC].set(wt1[:GRID_ENC])
    wt1t = wt1[GRID_ENC:GRID_ENC + target_len]
    wt1p = wt1[GRID_ENC + target_len:]

    # pad the final weight to a lane-dense 128-wide output
    wa4 = jnp.pad(ws[8], ((0, 0), (0, N_OUT_PAD - n_out)))

    weights = [ws[0], wg2, wt1g, wt1t, wt1p, ws[3], ws[4],
               ws[5], ws[6], ws[7], wa4]
    weights = [w.astype(jnp.bfloat16) for w in weights]        # cast once here

    # pack the nine biases (torch: bias.fill_(0.01)) into one (16, 256) f32 slab
    widths = [NUM, GRID_ENC, NUM, NUM, NUM, NUM, NUM, NUM, n_out]
    bias = jnp.zeros((BIAS_ROWS, BIAS_COLS), jnp.float32)
    for r, w in enumerate(widths):
        bias = bias.at[r, :w].set(0.01)

    return tuple(weights) + (bias,)


def reference_forward(grid_vec, target, pos, params, n_out):
    """Pure-JAX reference mirroring the PyTorch forward (same bf16 weights,
    f32 accumulation), used for numerical validation of the kernel.  It uses
    the unpadded weight slices, demonstrating the padding is inert."""
    (wg1, wg2, wt1g, wt1t, wt1p, wt2, wt3, wa1, wa2, wa3, wa4, b) = params

    def dot(x, w):
        return jnp.dot(x.astype(jnp.bfloat16), w,
                       preferred_element_type=jnp.float32)

    B = grid_vec.shape[0]
    x = grid_vec.reshape(B, -1)
    h = _lrelu(dot(x, wg1) + b[0])
    g = _lrelu(dot(h, wg2[:, :GRID_ENC]) + b[1, :GRID_ENC])
    enc = jnp.concatenate(
        [g, target.astype(jnp.float32), pos.astype(jnp.float32)], axis=1)
    wt1 = jnp.concatenate([wt1g[:GRID_ENC], wt1t, wt1p], axis=0)
    t = _lrelu(dot(enc, wt1) + b[2])
    t = _lrelu(dot(t, wt2) + b[3])
    t = _lrelu(dot(t, wt3) + b[4])
    a = _lrelu(dot(t, wa1) + b[5])
    a = _lrelu(dot(a, wa2) + b[6])
    a = _lrelu(dot(a, wa3) + b[7])
    out = dot(a, wa4[:, :n_out]) + b[8, :n_out]
    return out


if __name__ == "__main__":
    # Module hyper-params: grid 16x16, target_enc_len=4, pos_enc_len=4,
    # actions = 1 continuous + 1 binary + 1 categorical(4) -> n_out = 2+1+4 = 7
    B, GRID_LEN, GRID_W = 2, 16, 16
    TARGET_LEN, POS_LEN = 4, 4
    N_OUT = 2 * 1 + 1 + 4

    key = jax.random.PRNGKey(0)
    k_params, k_grid, k_tgt, k_pos = jax.random.split(key, 4)

    params = make_params(k_params, GRID_LEN * GRID_W, TARGET_LEN, POS_LEN, N_OUT)

    def run_and_check(grid_vec, target, pos):
        q = q_network_forward(grid_vec, target, pos, params, N_OUT)
        jax.block_until_ready(q)
        q_ref = reference_forward(grid_vec, target, pos, params, N_OUT)
        assert q.shape == (grid_vec.shape[0], N_OUT)
        # bf16 weights + bf16 output store -> relaxed tolerance vs f32-path ref
        assert jnp.allclose(q, q_ref, atol=2e-2, rtol=2e-2), (
            float(jnp.max(jnp.abs(q - q_ref))))
        return q

    # Module-sized batch: single resident tile, no padding, no ragged work.
    grid_vec = jax.random.normal(k_grid, (B, GRID_LEN, GRID_W), jnp.float32)
    target = jax.random.normal(k_tgt, (B, TARGET_LEN), jnp.float32)
    pos = jax.random.normal(k_pos, (B, POS_LEN), jnp.float32)
    run_and_check(grid_vec, target, pos)

    # Larger batch exercising the tiled path (2 grid steps + ragged padding).
    kg2, kt2, kp2 = jax.random.split(jax.random.PRNGKey(1), 3)
    run_and_check(jax.random.normal(kg2, (600, GRID_LEN, GRID_W), jnp.float32),
                  jax.random.normal(kt2, (600, TARGET_LEN), jnp.float32),
                  jax.random.normal(kp2, (600, POS_LEN), jnp.float32))

    print("KERNEL_OK")
</pallas_src>

<mosaic_0001>
module attributes {stable_mosaic.version = 11 : i64} {
  func.func @_qnet_kernel(%arg0: i32, %arg1: memref<2x256xf32, #tpu.memory_space<vmem>>, %arg2: memref<2x4xf32, #tpu.memory_space<vmem>>, %arg3: memref<2x4xf32, #tpu.memory_space<vmem>>, %arg4: memref<256x256xbf16, #tpu.memory_space<vmem>>, %arg5: memref<256x16xbf16, #tpu.memory_space<vmem>>, %arg6: memref<16x256xbf16, #tpu.memory_space<vmem>>, %arg7: memref<4x256xbf16, #tpu.memory_space<vmem>>, %arg8: memref<4x256xbf16, #tpu.memory_space<vmem>>, %arg9: memref<256x256xbf16, #tpu.memory_space<vmem>>, %arg10: memref<256x256xbf16, #tpu.memory_space<vmem>>, %arg11: memref<256x256xbf16, #tpu.memory_space<vmem>>, %arg12: memref<256x256xbf16, #tpu.memory_space<vmem>>, %arg13: memref<256x256xbf16, #tpu.memory_space<vmem>>, %arg14: memref<256x128xbf16, #tpu.memory_space<vmem>>, %arg15: memref<16x256xf32, #tpu.memory_space<vmem>>, %arg16: memref<2x128xbf16, #tpu.memory_space<vmem>>) attributes {dimension_semantics = [#tpu.dimension_semantics<parallel>], iteration_bounds = array<i64: 1>, scalar_prefetch = 0 : i64, scratch_operands = 0 : i64, tpu.core_type = #tpu.core_type<tc>, window_params = [{transform_indices = @transform_0, window_bounds = array<i64: 2, 256>}, {transform_indices = @transform_1, window_bounds = array<i64: 2, 4>}, {transform_indices = @transform_2, window_bounds = array<i64: 2, 4>}, {pipeline_mode = #tpu.pipeline_mode<synchronous>, transform_indices = @transform_3, window_bounds = array<i64: 256, 256>}, {pipeline_mode = #tpu.pipeline_mode<synchronous>, transform_indices = @transform_4, window_bounds = array<i64: 256, 16>}, {pipeline_mode = #tpu.pipeline_mode<synchronous>, transform_indices = @transform_5, window_bounds = array<i64: 16, 256>}, {pipeline_mode = #tpu.pipeline_mode<synchronous>, transform_indices = @transform_6, window_bounds = array<i64: 4, 256>}, {pipeline_mode = #tpu.pipeline_mode<synchronous>, transform_indices = @transform_7, window_bounds = array<i64: 4, 256>}, {pipeline_mode = #tpu.pipeline_mode<synchronous>, transform_indices = @transform_8, window_bounds = array<i64: 256, 256>}, {pipeline_mode = #tpu.pipeline_mode<synchronous>, transform_indices = @transform_9, window_bounds = array<i64: 256, 256>}, {pipeline_mode = #tpu.pipeline_mode<synchronous>, transform_indices = @transform_10, window_bounds = array<i64: 256, 256>}, {pipeline_mode = #tpu.pipeline_mode<synchronous>, transform_indices = @transform_11, window_bounds = array<i64: 256, 256>}, {pipeline_mode = #tpu.pipeline_mode<synchronous>, transform_indices = @transform_12, window_bounds = array<i64: 256, 256>}, {pipeline_mode = #tpu.pipeline_mode<synchronous>, transform_indices = @transform_13, window_bounds = array<i64: 256, 128>}, {pipeline_mode = #tpu.pipeline_mode<synchronous>, transform_indices = @transform_14, window_bounds = array<i64: 16, 256>}, {transform_indices = @transform_15, window_bounds = array<i64: 2, 128>}]} {
    %c0 = arith.constant 0 : index
    %c0_0 = arith.constant 0 : index
    %0 = vector.load %arg15[%c0, %c0_0] : memref<16x256xf32, #tpu.memory_space<vmem>>, vector<16x256xf32>
    %c0_1 = arith.constant 0 : index
    %c0_2 = arith.constant 0 : index
    %1 = vector.load %arg1[%c0_1, %c0_2] : memref<2x256xf32, #tpu.memory_space<vmem>>, vector<2x256xf32>
    %2 = arith.truncf %1 : vector<2x256xf32> to vector<2x256xbf16>
    %c0_3 = arith.constant 0 : index
    %c0_4 = arith.constant 0 : index
    %3 = vector.load %arg4[%c0_3, %c0_4] : memref<256x256xbf16, #tpu.memory_space<vmem>>, vector<256x256xbf16>
    %cst = arith.constant dense<0.000000e+00> : vector<2x256xf32>
    %4 = tpu.matmul %2, %3, %cst {dimension_numbers = #tpu.dot_dimension_numbers<[1], [0], [0], [1], [0, 0, 1, 1], [], []>} : vector<2x256xbf16>, vector<256x256xbf16>, vector<2x256xf32> -> vector<2x256xf32>
    %5 = vector.extract_strided_slice %0 {offsets = [0, 0], sizes = [1, 256], strides = [1, 1]} : vector<16x256xf32> to vector<1x256xf32>
    %6 = vector.broadcast %5 : vector<1x256xf32> to vector<2x256xf32>
    %7 = arith.addf %4, %6 : vector<2x256xf32>
    %cst_5 = arith.constant 0.00999999977 : f32
    %8 = vector.broadcast %cst_5 : f32 to vector<2x256xf32>
    %9 = arith.mulf %8, %7 : vector<2x256xf32>
    %10 = arith.maximumf %7, %9 : vector<2x256xf32>
    %11 = arith.truncf %10 : vector<2x256xf32> to vector<2x256xbf16>
    %c0_6 = arith.constant 0 : index
    %c0_7 = arith.constant 0 : index
    %12 = vector.load %arg5[%c0_6, %c0_7] : memref<256x16xbf16, #tpu.memory_space<vmem>>, vector<256x16xbf16>
    %cst_8 = arith.constant dense<0.000000e+00> : vector<2x16xf32>
    %13 = tpu.matmul %11, %12, %cst_8 {dimension_numbers = #tpu.dot_dimension_numbers<[1], [0], [0], [1], [0, 0, 1, 1], [], []>} : vector<2x256xbf16>, vector<256x16xbf16>, vector<2x16xf32> -> vector<2x16xf32>
    %14 = vector.extract_strided_slice %0 {offsets = [1, 0], sizes = [1, 16], strides = [1, 1]} : vector<16x256xf32> to vector<1x16xf32>
    %15 = vector.broadcast %14 : vector<1x16xf32> to vector<2x16xf32>
    %16 = arith.addf %13, %15 : vector<2x16xf32>
    %cst_9 = arith.constant 0.00999999977 : f32
    %17 = vector.broadcast %cst_9 : f32 to vector<2x16xf32>
    %18 = arith.mulf %17, %16 : vector<2x16xf32>
    %19 = arith.maximumf %16, %18 : vector<2x16xf32>
    %20 = arith.truncf %19 : vector<2x16xf32> to vector<2x16xbf16>
    %c0_10 = arith.constant 0 : index
    %c0_11 = arith.constant 0 : index
    %21 = vector.load %arg6[%c0_10, %c0_11] : memref<16x256xbf16, #tpu.memory_space<vmem>>, vector<16x256xbf16>
    %cst_12 = arith.constant dense<0.000000e+00> : vector<2x256xf32>
    %22 = tpu.matmul %20, %21, %cst_12 {dimension_numbers = #tpu.dot_dimension_numbers<[1], [0], [0], [1], [0, 0, 1, 1], [], []>} : vector<2x16xbf16>, vector<16x256xbf16>, vector<2x256xf32> -> vector<2x256xf32>
    %c0_13 = arith.constant 0 : index
    %c0_14 = arith.constant 0 : index
    %23 = vector.load %arg2[%c0_13, %c0_14] : memref<2x4xf32, #tpu.memory_space<vmem>>, vector<2x4xf32>
    %24 = arith.truncf %23 : vector<2x4xf32> to vector<2x4xbf16>
    %c0_15 = arith.constant 0 : index
    %c0_16 = arith.constant 0 : index
    %25 = vector.load %arg7[%c0_15, %c0_16] : memref<4x256xbf16, #tpu.memory_space<vmem>>, vector<4x256xbf16>
    %cst_17 = arith.constant dense<0.000000e+00> : vector<2x256xf32>
    %26 = tpu.matmul %24, %25, %cst_17 {dimension_numbers = #tpu.dot_dimension_numbers<[1], [0], [0], [1], [0, 0, 1, 1], [], []>} : vector<2x4xbf16>, vector<4x256xbf16>, vector<2x256xf32> -> vector<2x256xf32>
    %27 = arith.addf %22, %26 : vector<2x256xf32>
    %c0_18 = arith.constant 0 : index
    %c0_19 = arith.constant 0 : index
    %28 = vector.load %arg3[%c0_18, %c0_19] : memref<2x4xf32, #tpu.memory_space<vmem>>, vector<2x4xf32>
    %29 = arith.truncf %28 : vector<2x4xf32> to vector<2x4xbf16>
    %c0_20 = arith.constant 0 : index
    %c0_21 = arith.constant 0 : index
    %30 = vector.load %arg8[%c0_20, %c0_21] : memref<4x256xbf16, #tpu.memory_space<vmem>>, vector<4x256xbf16>
    %cst_22 = arith.constant dense<0.000000e+00> : vector<2x256xf32>
    %31 = tpu.matmul %29, %30, %cst_22 {dimension_numbers = #tpu.dot_dimension_numbers<[1], [0], [0], [1], [0, 0, 1, 1], [], []>} : vector<2x4xbf16>, vector<4x256xbf16>, vector<2x256xf32> -> vector<2x256xf32>
    %32 = arith.addf %27, %31 : vector<2x256xf32>
    %33 = vector.extract_strided_slice %0 {offsets = [2, 0], sizes = [1, 256], strides = [1, 1]} : vector<16x256xf32> to vector<1x256xf32>
    %34 = vector.broadcast %33 : vector<1x256xf32> to vector<2x256xf32>
    %35 = arith.addf %32, %34 : vector<2x256xf32>
    %cst_23 = arith.constant 0.00999999977 : f32
    %36 = vector.broadcast %cst_23 : f32 to vector<2x256xf32>
    %37 = arith.mulf %36, %35 : vector<2x256xf32>
    %38 = arith.maximumf %35, %37 : vector<2x256xf32>
    %39 = arith.truncf %38 : vector<2x256xf32> to vector<2x256xbf16>
    %c0_24 = arith.constant 0 : index
    %c0_25 = arith.constant 0 : index
    %40 = vector.load %arg9[%c0_24, %c0_25] : memref<256x256xbf16, #tpu.memory_space<vmem>>, vector<256x256xbf16>
    %cst_26 = arith.constant dense<0.000000e+00> : vector<2x256xf32>
    %41 = tpu.matmul %39, %40, %cst_26 {dimension_numbers = #tpu.dot_dimension_numbers<[1], [0], [0], [1], [0, 0, 1, 1], [], []>} : vector<2x256xbf16>, vector<256x256xbf16>, vector<2x256xf32> -> vector<2x256xf32>
    %42 = vector.extract_strided_slice %0 {offsets = [3, 0], sizes = [1, 256], strides = [1, 1]} : vector<16x256xf32> to vector<1x256xf32>
    %43 = vector.broadcast %42 : vector<1x256xf32> to vector<2x256xf32>
    %44 = arith.addf %41, %43 : vector<2x256xf32>
    %cst_27 = arith.constant 0.00999999977 : f32
    %45 = vector.broadcast %cst_27 : f32 to vector<2x256xf32>
    %46 = arith.mulf %45, %44 : vector<2x256xf32>
    %47 = arith.maximumf %44, %46 : vector<2x256xf32>
    %48 = arith.truncf %47 : vector<2x256xf32> to vector<2x256xbf16>
    %c0_28 = arith.constant 0 : index
    %c0_29 = arith.constant 0 : index
    %49 = vector.load %arg10[%c0_28, %c0_29] : memref<256x256xbf16, #tpu.memory_space<vmem>>, vector<256x256xbf16>
    %cst_30 = arith.constant dense<0.000000e+00> : vector<2x256xf32>
    %50 = tpu.matmul %48, %49, %cst_30 {dimension_numbers = #tpu.dot_dimension_numbers<[1], [0], [0], [1], [0, 0, 1, 1], [], []>} : vector<2x256xbf16>, vector<256x256xbf16>, vector<2x256xf32> -> vector<2x256xf32>
    %51 = vector.extract_strided_slice %0 {offsets = [4, 0], sizes = [1, 256], strides = [1, 1]} : vector<16x256xf32> to vector<1x256xf32>
    %52 = vector.broadcast %51 : vector<1x256xf32> to vector<2x256xf32>
    %53 = arith.addf %50, %52 : vector<2x256xf32>
    %cst_31 = arith.constant 0.00999999977 : f32
    %54 = vector.broadcast %cst_31 : f32 to vector<2x256xf32>
    %55 = arith.mulf %54, %53 : vector<2x256xf32>
    %56 = arith.maximumf %53, %55 : vector<2x256xf32>
    %57 = arith.truncf %56 : vector<2x256xf32> to vector<2x256xbf16>
    %c0_32 = arith.constant 0 : index
    %c0_33 = arith.constant 0 : index
    %58 = vector.load %arg11[%c0_32, %c0_33] : memref<256x256xbf16, #tpu.memory_space<vmem>>, vector<256x256xbf16>
    %cst_34 = arith.constant dense<0.000000e+00> : vector<2x256xf32>
    %59 = tpu.matmul %57, %58, %cst_34 {dimension_numbers = #tpu.dot_dimension_numbers<[1], [0], [0], [1], [0, 0, 1, 1], [], []>} : vector<2x256xbf16>, vector<256x256xbf16>, vector<2x256xf32> -> vector<2x256xf32>
    %60 = vector.extract_strided_slice %0 {offsets = [5, 0], sizes = [1, 256], strides = [1, 1]} : vector<16x256xf32> to vector<1x256xf32>
    %61 = vector.broadcast %60 : vector<1x256xf32> to vector<2x256xf32>
    %62 = arith.addf %59, %61 : vector<2x256xf32>
    %cst_35 = arith.constant 0.00999999977 : f32
    %63 = vector.broadcast %cst_35 : f32 to vector<2x256xf32>
    %64 = arith.mulf %63, %62 : vector<2x256xf32>
    %65 = arith.maximumf %62, %64 : vector<2x256xf32>
    %66 = arith.truncf %65 : vector<2x256xf32> to vector<2x256xbf16>
    %c0_36 = arith.constant 0 : index
    %c0_37 = arith.constant 0 : index
    %67 = vector.load %arg12[%c0_36, %c0_37] : memref<256x256xbf16, #tpu.memory_space<vmem>>, vector<256x256xbf16>
    %cst_38 = arith.constant dense<0.000000e+00> : vector<2x256xf32>
    %68 = tpu.matmul %66, %67, %cst_38 {dimension_numbers = #tpu.dot_dimension_numbers<[1], [0], [0], [1], [0, 0, 1, 1], [], []>} : vector<2x256xbf16>, vector<256x256xbf16>, vector<2x256xf32> -> vector<2x256xf32>
    %69 = vector.extract_strided_slice %0 {offsets = [6, 0], sizes = [1, 256], strides = [1, 1]} : vector<16x256xf32> to vector<1x256xf32>
    %70 = vector.broadcast %69 : vector<1x256xf32> to vector<2x256xf32>
    %71 = arith.addf %68, %70 : vector<2x256xf32>
    %cst_39 = arith.constant 0.00999999977 : f32
    %72 = vector.broadcast %cst_39 : f32 to vector<2x256xf32>
    %73 = arith.mulf %72, %71 : vector<2x256xf32>
    %74 = arith.maximumf %71, %73 : vector<2x256xf32>
    %75 = arith.truncf %74 : vector<2x256xf32> to vector<2x256xbf16>
    %c0_40 = arith.constant 0 : index
    %c0_41 = arith.constant 0 : index
    %76 = vector.load %arg13[%c0_40, %c0_41] : memref<256x256xbf16, #tpu.memory_space<vmem>>, vector<256x256xbf16>
    %cst_42 = arith.constant dense<0.000000e+00> : vector<2x256xf32>
    %77 = tpu.matmul %75, %76, %cst_42 {dimension_numbers = #tpu.dot_dimension_numbers<[1], [0], [0], [1], [0, 0, 1, 1], [], []>} : vector<2x256xbf16>, vector<256x256xbf16>, vector<2x256xf32> -> vector<2x256xf32>
    %78 = vector.extract_strided_slice %0 {offsets = [7, 0], sizes = [1, 256], strides = [1, 1]} : vector<16x256xf32> to vector<1x256xf32>
    %79 = vector.broadcast %78 : vector<1x256xf32> to vector<2x256xf32>
    %80 = arith.addf %77, %79 : vector<2x256xf32>
    %cst_43 = arith.constant 0.00999999977 : f32
    %81 = vector.broadcast %cst_43 : f32 to vector<2x256xf32>
    %82 = arith.mulf %81, %80 : vector<2x256xf32>
    %83 = arith.maximumf %80, %82 : vector<2x256xf32>
    %84 = arith.truncf %83 : vector<2x256xf32> to vector<2x256xbf16>
    %c0_44 = arith.constant 0 : index
    %c0_45 = arith.constant 0 : index
    %85 = vector.load %arg14[%c0_44, %c0_45] : memref<256x128xbf16, #tpu.memory_space<vmem>>, vector<256x128xbf16>
    %cst_46 = arith.constant dense<0.000000e+00> : vector<2x128xf32>
    %86 = tpu.matmul %84, %85, %cst_46 {dimension_numbers = #tpu.dot_dimension_numbers<[1], [0], [0], [1], [0, 0, 1, 1], [], []>} : vector<2x256xbf16>, vector<256x128xbf16>, vector<2x128xf32> -> vector<2x128xf32>
    %87 = vector.extract_strided_slice %0 {offsets = [8, 0], sizes = [1, 128], strides = [1, 1]} : vector<16x256xf32> to vector<1x128xf32>
    %88 = vector.broadcast %87 : vector<1x128xf32> to vector<2x128xf32>
    %89 = arith.addf %86, %88 : vector<2x128xf32>
    %90 = arith.truncf %89 : vector<2x128xf32> to vector<2x128xbf16>
    %c0_47 = arith.constant 0 : index
    %c0_48 = arith.constant 0 : index
    %91 = vector.load %arg16[%c0_47, %c0_48] : memref<2x128xbf16, #tpu.memory_space<vmem>>, vector<2x128xbf16>
    tpu.vector_store %arg16[%c0_47, %c0_48], %90 {strides = array<i32>} : memref<2x128xbf16, #tpu.memory_space<vmem>>, vector<2x128xbf16>,
    return
  }
  func.func @transform_0(%arg0: i32) -> (i32, i32) {
    %c0_i32 = arith.constant 0 : i32
    %c0_i32_0 = arith.constant 0 : i32
    return %arg0, %c0_i32 : i32, i32
  }
  func.func @transform_1(%arg0: i32) -> (i32, i32) {
    %c0_i32 = arith.constant 0 : i32
    %c0_i32_0 = arith.constant 0 : i32
    return %arg0, %c0_i32 : i32, i32
  }
  func.func @transform_2(%arg0: i32) -> (i32, i32) {
    %c0_i32 = arith.constant 0 : i32
    %c0_i32_0 = arith.constant 0 : i32
    return %arg0, %c0_i32 : i32, i32
  }
  func.func @transform_3(%arg0: i32) -> (i32, i32) {
    %c0_i32 = arith.constant 0 : i32
    %c0_i32_0 = arith.constant 0 : i32
    %c0_i32_1 = arith.constant 0 : i32
    return %c0_i32, %c0_i32_0 : i32, i32
  }
  func.func @transform_4(%arg0: i32) -> (i32, i32) {
    %c0_i32 = arith.constant 0 : i32
    %c0_i32_0 = arith.constant 0 : i32
    %c0_i32_1 = arith.constant 0 : i32
    return %c0_i32, %c0_i32_0 : i32, i32
  }
  func.func @transform_5(%arg0: i32) -> (i32, i32) {
    %c0_i32 = arith.constant 0 : i32
    %c0_i32_0 = arith.constant 0 : i32
    %c0_i32_1 = arith.constant 0 : i32
    return %c0_i32, %c0_i32_0 : i32, i32
  }
  func.func @transform_6(%arg0: i32) -> (i32, i32) {
    %c0_i32 = arith.constant 0 : i32
    %c0_i32_0 = arith.constant 0 : i32
    %c0_i32_1 = arith.constant 0 : i32
    return %c0_i32, %c0_i32_0 : i32, i32
  }
  func.func @transform_7(%arg0: i32) -> (i32, i32) {
    %c0_i32 = arith.constant 0 : i32
    %c0_i32_0 = arith.constant 0 : i32
    %c0_i32_1 = arith.constant 0 : i32
    return %c0_i32, %c0_i32_0 : i32, i32
  }
  func.func @transform_8(%arg0: i32) -> (i32, i32) {
    %c0_i32 = arith.constant 0 : i32
    %c0_i32_0 = arith.constant 0 : i32
    %c0_i32_1 = arith.constant 0 : i32
    return %c0_i32, %c0_i32_0 : i32, i32
  }
  func.func @transform_9(%arg0: i32) -> (i32, i32) {
    %c0_i32 = arith.constant 0 : i32
    %c0_i32_0 = arith.constant 0 : i32
    %c0_i32_1 = arith.constant 0 : i32
    return %c0_i32, %c0_i32_0 : i32, i32
  }
  func.func @transform_10(%arg0: i32) -> (i32, i32) {
    %c0_i32 = arith.constant 0 : i32
    %c0_i32_0 = arith.constant 0 : i32
    %c0_i32_1 = arith.constant 0 : i32
    return %c0_i32, %c0_i32_0 : i32, i32
  }
  func.func @transform_11(%arg0: i32) -> (i32, i32) {
    %c0_i32 = arith.constant 0 : i32
    %c0_i32_0 = arith.constant 0 : i32
    %c0_i32_1 = arith.constant 0 : i32
    return %c0_i32, %c0_i32_0 : i32, i32
  }
  func.func @transform_12(%arg0: i32) -> (i32, i32) {
    %c0_i32 = arith.constant 0 : i32
    %c0_i32_0 = arith.constant 0 : i32
    %c0_i32_1 = arith.constant 0 : i32
    return %c0_i32, %c0_i32_0 : i32, i32
  }
  func.func @transform_13(%arg0: i32) -> (i32, i32) {
    %c0_i32 = arith.constant 0 : i32
    %c0_i32_0 = arith.constant 0 : i32
    %c0_i32_1 = arith.constant 0 : i32
    return %c0_i32, %c0_i32_0 : i32, i32
  }
  func.func @transform_14(%arg0: i32) -> (i32, i32) {
    %c0_i32 = arith.constant 0 : i32
    %c0_i32_0 = arith.constant 0 : i32
    %c0_i32_1 = arith.constant 0 : i32
    return %c0_i32, %c0_i32_0 : i32, i32
  }
  func.func @transform_15(%arg0: i32) -> (i32, i32) {
    %c0_i32 = arith.constant 0 : i32
    %c0_i32_0 = arith.constant 0 : i32
    return %arg0, %c0_i32 : i32, i32
  }
}

</mosaic_0001>

<bundles_post_ra>
// kernel: tpu_custom_call.1
= control target key start
LH: loop header
LB: loop body
LE: loop exit
PB: predicated region body
PF: predicated region fallthrough
CT: control target
= control target key end

     0   :  { %20 = vsyncpa [#allocation3], 0  ;;  %s3890_s0 = inlined_call_operand.vmem [shape: f32[2,256], index: 0, kind: input, shape index: {}]   ;;  %s3891_s1 = inlined_call_operand.hbm [shape: f32[2,4], index: 1, kind: input, shape index: {}]   ;;  %s3892_s2 = inlined_call_operand.hbm [shape: f32[2,4], index: 2, kind: input, shape index: {}]   ;;  %s3893_s3 = inlined_call_operand.hbm [shape: bf16[256,256], index: 3, kind: input, shape index: {}]   ;;  %s3894_s4 = inlined_call_operand.vmem [shape: bf16[256,16], index: 4, kind: input, shape index: {}]   ;;  %s3895_s5 = inlined_call_operand.vmem [shape: bf16[16,256], index: 5, kind: input, shape index: {}]   ;;  %s3896_s6 = inlined_call_operand.vmem [shape: bf16[4,256], index: 6, kind: input, shape index: {}]   ;;  %s3897_s7 = inlined_call_operand.vmem [shape: bf16[4,256], index: 7, kind: input, shape index: {}]   ;;  %s3898_s8 = inlined_call_operand.hbm [shape: bf16[256,256], index: 8, kind: input, shape index: {}]   ;;  %s3899_s9 = inlined_call_operand.hbm [shape: bf16[256,256], index: 9, kind: input, shape index: {}]   ;;  %s3900_s10 = inlined_call_operand.hbm [shape: bf16[256,256], index: 10, kind: input, shape index: {}]   ;;  %s3901_s11 = inlined_call_operand.hbm [shape: bf16[256,256], index: 11, kind: input, shape index: {}]   ;;  %s3902_s12 = inlined_call_operand.hbm [shape: bf16[256,256], index: 12, kind: input, shape index: {}]   ;;  %s3903_s13 = inlined_call_operand.vmem [shape: bf16[256,128], index: 13, kind: input, shape index: {}]   ;;  %s3904_s14 = inlined_call_operand.hbm [shape: f32[16,256], index: 14, kind: input, shape index: {}]   ;;  %s3905_s15 = inlined_call_operand.hbm [shape: bf16[2,128], index: 15, kind: output, shape index: {}]  }
   0x1   :  { %21 = vsyncpa [#allocation6], 0 }
   0x2   :  { %22 = vsyncpa [#allocation9], 0 }
   0x3   :  { %23 = vsyncpa [#allocation12], 0 }
   0x4   :  { %24 = vsyncpa [#allocation15], 0  ;;  %s44_s20 = sshll.u32 %s3892_s2, 4  ;;  %s45_s20 = int_to_ptr.hbm [resolvable:$true] %s44_s20 }
   0x5   :  { %25 = vsyncpa [#allocation4], 0  ;;  %s3588_s21 = smov [#allocation5]   ;;  %s75_s25 = sshll.u32 %s3898_s8, 4  ;;  %s76_s25 = int_to_ptr.hbm [resolvable:$true] %s75_s25 }
   0x6   :  { %s46_s22 = sshll.u32 %s3588_s21, 4  ;;  %s3589_s26 = smov [#allocation8]   ;;  %s47_s22 = int_to_ptr.vmem [resolvable:$true] %s46_s22 }
   0x7   :  { %49 = dma.hbm_to_vmem [thread:$0]  %s45_s20, 32, %s47_s22, [#allocation6]  }
   0x8   :  { %s77_s27 = sshll.u32 %s3589_s26, 4  ;;  %s101_s30 = sshll.u32 %s3900_s10, 4  ;;  %s78_s27 = int_to_ptr.vmem [resolvable:$true] %s77_s27  ;;  %s102_s30 = int_to_ptr.hbm [resolvable:$true] %s101_s30 }
   0x9   :  { %s3590_s2 = smov 128   ;;  %s3591_s16 = smov 8  }
   0xa   :  { %83 = dma.hbm_to_vmem [thread:$0]  %s76_s25, 4096, %s78_s27, [#allocation9], %s3590_s2, %s3590_s2, %s3591_s16  }
   0xb   :  { %s127_s19 = sshll.u32 %s3902_s12, 4  ;;  %s3592_s8 = smov [#allocation11]   ;;  %s128_s19 = int_to_ptr.hbm [resolvable:$true] %s127_s19 }
   0xc   :  { %s103_s20 = sshll.u32 %s3592_s8, 4  ;;  %s3593_s10 = smov [#allocation14]   ;;  %s104_s20 = int_to_ptr.vmem [resolvable:$true] %s103_s20 }
   0xd   :  { %109 = dma.hbm_to_vmem [thread:$0]  %s102_s30, 4096, %s104_s20, [#allocation12], %s3590_s2, %s3590_s2, %s3591_s16  }
   0xe   :  { %s129_s21 = sshll.u32 %s3593_s10, 4  ;;  %s33_s24 = sshll.u32 %s3891_s1, 4  ;;  %s130_s21 = int_to_ptr.vmem [resolvable:$true] %s129_s21  ;;  %s34_s24 = int_to_ptr.hbm [resolvable:$true] %s33_s24 }
   0xf   :  { %135 = dma.hbm_to_vmem [thread:$0]  %s128_s19, 4096, %s130_s21, [#allocation15], %s3590_s2, %s3590_s2, %s3591_s16  }
  0x10   :  { %s54_s26 = sshll.u32 %s3893_s3, 4  ;;  %s3594_s27 = smov [#allocation2]   ;;  %s55_s26 = int_to_ptr.hbm [resolvable:$true] %s54_s26 }
  0x11   :  { %s35_s28 = sshll.u32 %s3594_s27, 4  ;;  %s3595_s29 = smov [#allocation7]   ;;  %s36_s28 = int_to_ptr.vmem [resolvable:$true] %s35_s28 }
  0x12   :  { %38 = dma.hbm_to_vmem [thread:$0]  %s34_s24, 32, %s36_s28, [#allocation3]  }
  0x13   :  { %s56_s30 = sshll.u32 %s3595_s29, 4  ;;  %s88_s1 = sshll.u32 %s3899_s9, 4  ;;  %s57_s30 = int_to_ptr.vmem [resolvable:$true] %s56_s30  ;;  %s89_s1 = int_to_ptr.hbm [resolvable:$true] %s88_s1 }
  0x14   :  { %62 = dma.hbm_to_vmem [thread:$0]  %s55_s26, 4096, %s57_s30, [#allocation6], %s3590_s2, %s3590_s2, %s3591_s16  }
  0x15   :  { %s114_s3 = sshll.u32 %s3901_s11, 4  ;;  %s3596_s20 = smov [#allocation10]   ;;  %s115_s3 = int_to_ptr.hbm [resolvable:$true] %s114_s3 }
  0x16   :  { %s90_s10 = sshll.u32 %s3596_s20, 4  ;;  %s3597_s21 = smov [#allocation13]   ;;  %s91_s10 = int_to_ptr.vmem [resolvable:$true] %s90_s10 }
  0x17   :  { %96 = dma.hbm_to_vmem [thread:$0]  %s89_s1, 4096, %s91_s10, [#allocation9], %s3590_s2, %s3590_s2, %s3591_s16  }
  0x18   :  { %s116_s9 = sshll.u32 %s3597_s21, 4  ;;  %s142_s24 = sshll.u32 %s3904_s14, 4  ;;  %s117_s9 = int_to_ptr.vmem [resolvable:$true] %s116_s9  ;;  %s143_s24 = int_to_ptr.hbm [resolvable:$true] %s142_s24 }
  0x19   :  { %122 = dma.hbm_to_vmem [thread:$0]  %s115_s3, 4096, %s117_s9, [#allocation12], %s3590_s2, %s3590_s2, %s3591_s16  }
  0x1a   :  { %s3598_s11 = smov [#allocation16]   ;;  %s3599_s25 = smov 256  }
  0x1b   :  { %s144_s12 = sshll.u32 %s3598_s11, 4  ;;  %s3600_s26 = smov 16   ;;  %s145_s12 = int_to_ptr.vmem [resolvable:$true] %s144_s12 }
  0x1c   :  { %150 = dma.hbm_to_vmem [thread:$0]  %s143_s24, 512, %s145_s12, [#allocation15], %s3599_s25, %s3599_s25, %s3600_s26  }
  0x1d   :  { %3576 = dma.done.wait [#allocation3], 32  }
  0x1e   :  { %3577 = vsyncadd [#allocation3], 4294967264 }
  0x1f   :  { %3578 = dma.done.wait [#allocation6], 4128  }
  0x20   :  { %3579 = vsyncadd [#allocation6], 4294963168 }
  0x21   :  { %3580 = dma.done.wait [#allocation9], 8192  }
  0x22   :  { %3581 = vsyncadd [#allocation9], 4294959104 }
  0x23   :  { %3582 = dma.done.wait [#allocation12], 8192  }
  0x24   :  { %3583 = vsyncadd [#allocation12], 4294959104 }
  0x25   :  { %3584 = dma.done.wait [#allocation15], 4608  }
  0x26   :  { %3585 = vsyncadd [#allocation15], 4294962688  ;;  %v2242_v0 = vld [vmem:[#allocation7 + $0x70] sm:$0xf]  ;;  %v3109_v1 = vld [vmem:[#allocation7 + $0x74] sm:$0xf0] }
  0x27   :  { %v2306_v2 = vld [vmem:[#allocation7 + $0xf0] sm:$0xf]  ;;  %v2243_v3 = vor.u32 %v3109_v1, %v2242_v0  ;;  %v3125_v4 = vld [vmem:[#allocation7 + $0xf4] sm:$0xf0]  ;;  %v3108_v5 = vld [vmem:[#allocation7 + $0x74] sm:$0xf] }
  0x28   :  { %v2244_v6 = vld [vmem:[#allocation7 + $0x78] sm:$0xf0]  ;;  %v2307_v7 = vor.u32 %v3125_v4, %v2306_v2  ;;  %v3124_v9 = vld [vmem:[#allocation7 + $0xf4] sm:$0xf]  ;;  %v2234_v11 = vld [vmem:[#allocation7 + $0x60] sm:$0xf] }
  0x29   :  { %v2247_v8 = vor.u32 %v3108_v5, %v2244_v6  ;;  %v2308_v10 = vld [vmem:[#allocation7 + $0xf8] sm:$0xf0]  ;;  %394 = vmatpush.bf16.msra.mxu0 %v2243_v3  ;;  %v3107_v13 = vld [vmem:[#allocation7 + $0x64] sm:$0xf0]  ;;  %v2298_v14 = vld [vmem:[#allocation7 + $0xe0] sm:$0xf] }
  0x2a   :  { %v2311_v12 = vor.u32 %v3124_v9, %v2308_v10  ;;  %v3123_v15 = vld [vmem:[#allocation7 + $0xe4] sm:$0xf0]  ;;  %407 = vmatpush.bf16.msra.mxu1 %v2307_v7  ;;  %v2235_v16 = vor.u32 %v3107_v13, %v2234_v11  ;;  %v3106_v18 = vld [vmem:[#allocation7 + $0x64] sm:$0xf]  ;;  %v2236_v19 = vld [vmem:[#allocation7 + $0x68] sm:$0xf0] }
  0x2b   :  { %420 = vmatpush.bf16.msra.mxu2 %v2247_v8  ;;  %v2299_v17 = vor.u32 %v3123_v15, %v2298_v14  ;;  %v3122_v20 = vld [vmem:[#allocation7 + $0xe4] sm:$0xf]  ;;  %v2239_v21 = vor.u32 %v3106_v18, %v2236_v19  ;;  %v2300_v22 = vld [vmem:[#allocation7 + $0xe8] sm:$0xf0]  ;;  %v2226_v23 = vld [vmem:[#allocation7 + $0x50] sm:$0xf] }
  0x2c   :  { %433 = vmatpush.bf16.msra.mxu3 %v2311_v12  ;;  %v3105_v24 = vld [vmem:[#allocation7 + $0x54] sm:$0xf0]  ;;  %v2303_v25 = vor.u32 %v3122_v20, %v2300_v22  ;;  %v2290_v26 = vld [vmem:[#allocation7 + $0xd0] sm:$0xf]  ;;  %v3104_v28 = vld [vmem:[#allocation7 + $0x54] sm:$0xf] }
  0x2d   :  { %v3121_v27 = vld [vmem:[#allocation7 + $0xd4] sm:$0xf0]  ;;  %395 = vmatpush.bf16.msra.mxu0 %v2235_v16  ;;  %v2227_v29 = vor.u32 %v3105_v24, %v2226_v23  ;;  %v2228_v30 = vld [vmem:[#allocation7 + $0x58] sm:$0xf0]  ;;  %v3120_v31 = vld [vmem:[#allocation7 + $0xd4] sm:$0xf] }
  0x2e   :  { %v2292_v32 = vld [vmem:[#allocation7 + $0xd8] sm:$0xf0]  ;;  %408 = vmatpush.bf16.msra.mxu1 %v2299_v17  ;;  %v2291_v33 = vor.u32 %v3121_v27, %v2290_v26  ;;  %v2231_v34 = vor.u32 %v3104_v28, %v2228_v30  ;;  %v2218_v35 = vld [vmem:[#allocation7 + $0x40] sm:$0xf]  ;;  %v3103_v36 = vld [vmem:[#allocation7 + $0x44] sm:$0xf0] }
  0x2f   :  { %421 = vmatpush.bf16.msra.mxu2 %v2239_v21  ;;  %v2282_v37 = vld [vmem:[#allocation7 + $0xc0] sm:$0xf]  ;;  %v2295_v38 = vor.u32 %v3120_v31, %v2292_v32  ;;  %v3119_v39 = vld [vmem:[#allocation7 + $0xc4] sm:$0xf0]  ;;  %v3102_v40 = vld [vmem:[#allocation7 + $0x44] sm:$0xf]  ;;  %v2219_v44 = vor.u32 %v3103_v36, %v2218_v35 }
  0x30   :  { %434 = vmatpush.bf16.msra.mxu3 %v2303_v25  ;;  %v2220_v41 = vld [vmem:[#allocation7 + $0x48] sm:$0xf0]  ;;  %v3118_v42 = vld [vmem:[#allocation7 + $0xc4] sm:$0xf]  ;;  %v2283_v45 = vor.u32 %v3119_v39, %v2282_v37  ;;  %v2210_v47 = vld [vmem:[#allocation7 + $0x30] sm:$0xf] }
  0x31   :  { %v2284_v43 = vld [vmem:[#allocation7 + $0xc8] sm:$0xf0]  ;;  %396 = vmatpush.bf16.msra.mxu0 %v2227_v29  ;;  %v2223_v46 = vor.u32 %v3102_v40, %v2220_v41  ;;  %v3101_v48 = vld [vmem:[#allocation7 + $0x34] sm:$0xf0]  ;;  %v2274_v49 = vld [vmem:[#allocation7 + $0xb0] sm:$0xf] }
  0x32   :  { %409 = vmatpush.bf16.msra.mxu1 %v2291_v33  ;;  %v2287_v50 = vor.u32 %v3118_v42, %v2284_v43  ;;  %v3117_v51 = vld [vmem:[#allocation7 + $0xb4] sm:$0xf0]  ;;  %v3100_v52 = vld [vmem:[#allocation7 + $0x34] sm:$0xf]  ;;  %v2212_v53 = vld [vmem:[#allocation7 + $0x38] sm:$0xf0]  ;;  %v2211_v56 = vor.u32 %v3101_v48, %v2210_v47 }
  0x33   :  { %422 = vmatpush.bf16.msra.mxu2 %v2231_v34  ;;  %v3116_v54 = vld [vmem:[#allocation7 + $0xb4] sm:$0xf]  ;;  %v2276_v55 = vld [vmem:[#allocation7 + $0xb8] sm:$0xf0]  ;;  %v2275_v57 = vor.u32 %v3117_v51, %v2274_v49  ;;  %v2215_v58 = vor.u32 %v3100_v52, %v2212_v53  ;;  %v2202_v59 = vld [vmem:[#allocation7 + $0x20] sm:$0xf] }
  0x34   :  { %435 = vmatpush.bf16.msra.mxu3 %v2295_v38  ;;  %v3099_v60 = vld [vmem:[#allocation7 + $0x24] sm:$0xf0]  ;;  %v2266_v61 = vld [vmem:[#allocation7 + $0xa0] sm:$0xf]  ;;  %v2279_v62 = vor.u32 %v3116_v54, %v2276_v55  ;;  %v3098_v0 = vld [vmem:[#allocation7 + $0x24] sm:$0xf] }
  0x35   :  { %397 = vmatpush.bf16.msra.mxu0 %v2219_v44  ;;  %v3115_v63 = vld [vmem:[#allocation7 + $0xa4] sm:$0xf0]  ;;  %v2204_v1 = vld [vmem:[#allocation7 + $0x28] sm:$0xf0]  ;;  %v3114_v2 = vld [vmem:[#allocation7 + $0xa4] sm:$0xf]  ;;  %v2203_v4 = vor.u32 %v3099_v60, %v2202_v59 }
  0x36   :  { %410 = vmatpush.bf16.msra.mxu1 %v2283_v45  ;;  %v2268_v3 = vld [vmem:[#allocation7 + $0xa8] sm:$0xf0]  ;;  %v2194_v5 = vld [vmem:[#allocation7 + $0x10] sm:$0xf]  ;;  %v2267_v6 = vor.u32 %v3115_v63, %v2266_v61  ;;  %v2207_v7 = vor.u32 %v3098_v0, %v2204_v1  ;;  %v3097_v8 = vld [vmem:[#allocation7 + $0x14] sm:$0xf0] }
  0x37   :  { %423 = vmatpush.bf16.msra.mxu2 %v2223_v46  ;;  %v2258_v9 = vld [vmem:[#allocation7 + $0x90] sm:$0xf]  ;;  %v3113_v10 = vld [vmem:[#allocation7 + $0x94] sm:$0xf0]  ;;  %v2271_v11 = vor.u32 %v3114_v2, %v2268_v3  ;;  %v3096_v12 = vld [vmem:[#allocation7 + $0x14] sm:$0xf]  ;;  %v2195_v17 = vor.u32 %v3097_v8, %v2194_v5 }
  0x38   :  { %436 = vmatpush.bf16.msra.mxu3 %v2287_v50  ;;  %v2196_v13 = vld [vmem:[#allocation7 + $0x18] sm:$0xf0]  ;;  %v191_v14 = vld [vmem:[%s3890_s0] sm:$0xf]  ;;  %v2259_v18 = vor.u32 %v3113_v10, %v2258_v9  ;;  %v2186_v20 = vld [vmem:[#allocation7] sm:$0xf] }
  0x39   :  { %398 = vmatpush.bf16.msra.mxu0 %v2211_v56  ;;  %v3112_v15 = vld [vmem:[#allocation7 + $0x94] sm:$0xf]  ;;  %v2260_v16 = vld [vmem:[#allocation7 + $0x98] sm:$0xf0]  ;;  %193 = vst [vmem:[#allocation1] ss:$4 sm:$0xff] %v191_v14  ;;  %v2199_v19 = vor.u32 %v3096_v12, %v2196_v13 }
  0x3a   :  { %411 = vmatpush.bf16.msra.mxu1 %v2275_v57  ;;  %v3095_v21 = vld [vmem:[#allocation7 + $0x4] sm:$0xf0]  ;;  %v2250_v22 = vld [vmem:[#allocation7 + $0x80] sm:$0xf]  ;;  %v2263_v23 = vor.u32 %v3112_v15, %v2260_v16  ;;  %v3094_v25 = vld [vmem:[#allocation7 + $0x4] sm:$0xf] }
  0x3b   :  { %424 = vmatpush.bf16.msra.mxu2 %v2215_v58  ;;  %v3111_v24 = vld [vmem:[#allocation7 + $0x84] sm:$0xf0]  ;;  %v2188_v26 = vld [vmem:[#allocation7 + $0x8] sm:$0xf0]  ;;  %v3110_v27 = vld [vmem:[#allocation7 + $0x84] sm:$0xf]  ;;  %v2187_v29 = vor.u32 %v3095_v21, %v2186_v20 }
  0x3c   :  { %437 = vmatpush.bf16.msra.mxu3 %v2279_v62  ;;  %v2252_v28 = vld [vmem:[#allocation7 + $0x88] sm:$0xf0]  ;;  %v614_v30 = vld [vmem:[%s3896_s6] sm:$0xf]  ;;  %v2251_v31 = vor.u32 %v3111_v24, %v2250_v22  ;;  %v2191_v32 = vor.u32 %v3094_v25, %v2188_v26  ;;  %v3132_v40 = vld [vmem:[%s3894_s4 + $0x30] sm:$0xff]  ;;  %vm623_vm0 = vcmask 1041408  }
  0x3d   :  { %399 = vmatpush.bf16.msra.mxu0 %v2203_v4  ;;  %v3133_v33 = vld [vmem:[%s3894_s4 + $0x38] sm:$0xff]  ;;  %v2255_v34 = vor.u32 %v3110_v27, %v2252_v28  ;;  %v3140_v41 = vld [vmem:[%s3894_s4 + $0x70] sm:$0xff]  ;;  %v3131_v42 = vld [vmem:[%s3894_s4 + $0x28] sm:$0xff]  ;;  %vm619_vm1 = vcmask 31744   ;;  %vm664_vm2 = vcmask 130048   ;;  %s2170_s12 = sshll.u32 %s3905_s15, 4  ;;  %s2171_s12 = int_to_ptr.hbm [resolvable:$true] %s2170_s12 }
  0x3e   :  { %412 = vmatpush.bf16.msra.mxu1 %v2267_v6  ;;  %v3141_v38 = vld [vmem:[%s3894_s4 + $0x78] sm:$0xff]  ;;  %v3139_v43 = vld [vmem:[%s3894_s4 + $0x68] sm:$0xff]  ;;  %v3130_v44 = vld [vmem:[%s3894_s4 + $0x20] sm:$0xff] }
  0x3f   :  { %425 = vmatpush.bf16.msra.mxu2 %v2207_v7  ;;  %v3138_v45 = vld [vmem:[%s3894_s4 + $0x60] sm:$0xff]  ;;  %v3129_v46 = vld [vmem:[%s3894_s4 + $0x18] sm:$0xff]  ;;  %v3128_v47 = vld [vmem:[%s3894_s4 + $0x10] sm:$0xff] }
  0x40   :  { %438 = vmatpush.bf16.msra.mxu3 %v2271_v11  ;;  %v194_v35 = vld.sshfl [vmem:[#allocation1] sm:$0xff pattern:$0x73625140]  ;;  %v195_v36 = vld.sshfl [vmem:[#allocation1 + $0x8] sm:$0xff pattern:$0x73625140] }
  0x41   :  { %400 = vmatpush.bf16.msra.mxu0 %v2195_v17  ;;  %v198_v37 = vpack.c.bf16 %v194_v35, %v194_v35  ;;  %616 = vst [vmem:[#allocation1] ss:$4 sm:$0xff] %v614_v30  ;;  %v199_v39 = vpack.c.bf16 %v195_v36, %v195_v36  ;;  %v3137_v48 = vld [vmem:[%s3894_s4 + $0x58] sm:$0xff]  ;;  %v3127_v49 = vld [vmem:[%s3894_s4 + $0x8] sm:$0xff]  ;;  %v3136_v50 = vld [vmem:[%s3894_s4 + $0x50] sm:$0xff] }
  0x42   :  { %413 = vmatpush.bf16.msra.mxu1 %v2259_v18  ;;  %v3126_v51 = vld [vmem:[%s3894_s4] sm:$0xff]  ;;  %v3135_v52 = vld [vmem:[%s3894_s4 + $0x48] sm:$0xff]  ;;  %v3797_v5 = vld [vmem:[#allocation16 + $0x8] sm:$0xff] }
  0x43   :  { %426 = vmatpush.bf16.msra.mxu2 %v2199_v19  ;;  %v3134_v53 = vld [vmem:[%s3894_s4 + $0x40] sm:$0xff]  ;;  %v612_v58 = vld [vmem:[#allocation2] sm:$0x3]  ;;  %v3794_v0 = vld [vmem:[#allocation16] sm:$0xff]  ;;  %v233_v7 = vperm.slane %v3797_v5, 0 }
  0x44   :  { %439 = vmatpush.bf16.msra.mxu3 %v2263_v23  ;;  %v696_v55 = vld [vmem:[%s3897_s7] sm:$0xf]  ;;  %v613_v60 = vpack.c.bf16 %v612_v58, %v612_v58  ;;  %v3143_v62 = vld [vmem:[%s3895_s5 + $0x4] sm:$0xf0]  ;;  %v232_v1 = vperm.slane %v3794_v0, 0 }
  0x45   :  { %401 = vmatpush.bf16.msra.mxu0 %v2187_v29  ;;  %v2380_v61 = vld [vmem:[%s3895_s5] sm:$0xf]  ;;  %v3142_v22 = vld [vmem:[%s3895_s5 + $0x4] sm:$0xf]  ;;  %v2382_v23 = vld [vmem:[%s3895_s5 + $0x8] sm:$0xf0] }
  0x46   :  { %414 = vmatpush.bf16.msra.mxu1 %v2251_v31  ;;  %v2381_v63 = vor.u32 %v3143_v62, %v2380_v61  ;;  %v2385_v24 = vor.u32 %v3142_v22, %v2382_v23  ;;  %v694_v28 = vld [vmem:[#allocation5] sm:$0x3]  ;;  %v2448_v31 = vld [vmem:[#allocation8 + $0x70] sm:$0xf]  ;;  %v3175_v35 = vld [vmem:[#allocation8 + $0xf4] sm:$0xf0] }
  0x47   :  { %427 = vmatpush.bf16.msra.mxu2 %v2191_v32  ;;  %v695_v30 = vpack.c.bf16 %v694_v28, %v694_v28  ;;  %v3159_v32 = vld [vmem:[#allocation8 + $0x74] sm:$0xf0]  ;;  %v3158_v36 = vld [vmem:[#allocation8 + $0x74] sm:$0xf]  ;;  %v3169_v23 = vld [vmem:[#allocation8 + $0xc4] sm:$0xf0] }
  0x48   :  { %440 = vmatpush.bf16.msra.mxu3 %v2255_v34  ;;  %402 = vmatmul.bf16.vlgmr.msra.gmra.mxu0 %v198_v37  ;;  %v617_v54 = vld.sshfl [vmem:[#allocation1] sm:$0xff pattern:$0x73625140]  ;;  %v618_v57 = vld.sshfl [vmem:[#allocation1 + $0x8] sm:$0xff pattern:$0x73625140]  ;;  %v2449_v34 = vor.u32 %v3159_v32, %v2448_v31 }
  0x49   :  { %581 = vmatpush.bf16.msrb.mxu0 %v3133_v33  ;;  %415 = vmatmul.bf16.vlgmr.msra.gmra.mxu1 %v199_v39  ;;  %v624_v56 = vsel %vm623_vm0, %v617_v54, 0  ;;  %v626_v59 = vsel %vm623_vm0, %v618_v57, 0  ;;  %698 = vst [vmem:[#allocation1] ss:$4 sm:$0xff] %v696_v55  ;;  %v2512_v33 = vld [vmem:[#allocation8 + $0xf0] sm:$0xf] }
  0x4a   :  { %594 = vmatpush.bf16.msrb.mxu1 %v3141_v38  ;;  %428 = vmatmul.bf16.vlgmr.msra.gmra.mxu2 %v198_v37  ;;  %v2450_v37 = vld [vmem:[#allocation8 + $0x78] sm:$0xf0]  ;;  %v2506_v55 = vld [vmem:[#allocation8 + $0xe8] sm:$0xf0]  ;;  %v3155_v57 = vld [vmem:[#allocation8 + $0x54] sm:$0xf0] }
  0x4b   :  { %441 = vmatmul.bf16.vlgmr.msra.gmra.mxu3 %v199_v39  ;;  %635 = vmatpush.bf16.msrb.mxu2 %v624_v56  ;;  %v2513_v39 = vor.u32 %v3175_v35, %v2512_v33  ;;  %v2432_v56 = vld [vmem:[#allocation8 + $0x50] sm:$0xf]  ;;  %v3154_v61 = vld [vmem:[#allocation8 + $0x54] sm:$0xf]  ;;  %v3168_v28 = vld [vmem:[#allocation8 + $0xc4] sm:$0xf] }
  0x4c   :  { %648 = vmatpush.bf16.msrb.mxu3 %v626_v59  ;;  %v2496_v59 = vld [vmem:[#allocation8 + $0xd0] sm:$0xf]  ;;  %v2433_v62 = vor.u32 %v3155_v57, %v2432_v56  ;;  %v3151_v32 = vld [vmem:[#allocation8 + $0x34] sm:$0xf0]  ;;  %v3164_v56 = vld [vmem:[#allocation8 + $0xa4] sm:$0xf] }
  0x4d   :  { %582 = vmatpush.bf16.msrb.mxu0 %v3132_v40  ;;  %v2453_v40 = vor.u32 %v3158_v36, %v2450_v37  ;;  %v2480_v33 = vld [vmem:[#allocation8 + $0xb0] sm:$0xf]  ;;  %v3150_v37 = vld [vmem:[#allocation8 + $0x34] sm:$0xf]  ;;  %v2474_v57 = vld [vmem:[#allocation8 + $0xa8] sm:$0xf0] }
  0x4e   :  { %595 = vmatpush.bf16.msrb.mxu1 %v3140_v41  ;;  %v3174_v41 = vld [vmem:[#allocation8 + $0xf4] sm:$0xf] }
  0x4f   :  { %675 = vmatpush.bf16.msra.mxu2 %v2381_v63  ;;  %v2434_v63 = vld [vmem:[#allocation8 + $0x58] sm:$0xf0] }
  0x50   :  { %688 = vmatpush.bf16.msra.mxu3 %v2385_v24  ;;  %v699_v25 = vld.sshfl [vmem:[#allocation1] sm:$0xff pattern:$0x73625140]  ;;  %v700_v27 = vld.sshfl [vmem:[#allocation1 + $0x8] sm:$0xff pattern:$0x73625140] }
  0x51   :  { %583 = vmatpush.bf16.msrb.mxu0 %v3131_v42  ;;  %v704_v26 = vsel %vm623_vm0, %v699_v25, 0  ;;  %v706_v29 = vsel %vm623_vm0, %v700_v27, 0  ;;  %v2514_v42 = vld [vmem:[#allocation8 + $0xf8] sm:$0xf0]  ;;  %v3152_v24 = vld [vmem:[#allocation8 + $0x44] sm:$0xf] }
  0x52   :  { %596 = vmatpush.bf16.msrb.mxu1 %v3139_v43  ;;  %v2440_v43 = vld [vmem:[#allocation8 + $0x60] sm:$0xf]  ;;  %v2426_v25 = vld [vmem:[#allocation8 + $0x48] sm:$0xf0] }
  0x53   :  { %v2429_v27 = vor.u32 %v3152_v24, %v2426_v25  ;;  %v3207_v24 = vld [vmem:[#allocation10 + $0xf4] sm:$0xf0]  ;;  %v3206_v25 = vld [vmem:[#allocation10 + $0xf4] sm:$0xf] }
  0x55   :  { %584 = vmatpush.bf16.msrb.mxu0 %v3130_v44 }
  0x56   :  { %597 = vmatpush.bf16.msrb.mxu1 %v3138_v45  ;;  %v2517_v45 = vor.u32 %v3174_v41, %v2514_v42  ;;  %v2482_v42 = vld [vmem:[#allocation8 + $0xb8] sm:$0xf0] }
  0x59   :  { %585 = vmatpush.bf16.msrb.mxu0 %v3129_v46  ;;  %v3157_v46 = vld [vmem:[#allocation8 + $0x64] sm:$0xf0] }
  0x5a   :  { %598 = vmatpush.bf16.msrb.mxu1 %v3137_v48  ;;  %2376 = vmatmul.msk.bf16.vlgmr.msrb.gmra.mxu2 %vm619_vm1, %v613_v60  ;;  %v3173_v48 = vld [vmem:[#allocation8 + $0xe4] sm:$0xf0] }
  0x5b   :  { %2377 = vmatmul.msk.bf16.vlgmr.msrb.gmra.mxu3 %vm619_vm1, %v613_v60  ;;  %940 = vmatpush.bf16.msrb.mxu2 %v2449_v34  ;;  %v3171_v60 = vld [vmem:[#allocation8 + $0xd4] sm:$0xf0] }
  0x5c   :  { %953 = vmatpush.bf16.msrb.mxu3 %v2513_v39  ;;  %v3167_v34 = vld [vmem:[#allocation8 + $0xb4] sm:$0xf0]  ;;  %v2418_v39 = vld [vmem:[#allocation8 + $0x38] sm:$0xf0] }
  0x5d   :  { %586 = vmatpush.bf16.msrb.mxu0 %v3128_v47  ;;  %v2504_v47 = vld [vmem:[#allocation8 + $0xe0] sm:$0xf]  ;;  %v2481_v36 = vor.u32 %v3167_v34, %v2480_v33  ;;  %v2421_v41 = vor.u32 %v3150_v37, %v2418_v39  ;;  %v2576_v33 = vld [vmem:[#allocation10 + $0x70] sm:$0xf]  ;;  %v2578_v37 = vld [vmem:[#allocation10 + $0x78] sm:$0xf0] }
  0x5e   :  { %599 = vmatpush.bf16.msrb.mxu1 %v3136_v50  ;;  %v2505_v50 = vor.u32 %v3173_v48, %v2504_v47  ;;  %v2408_v47 = vld [vmem:[#allocation8 + $0x20] sm:$0xf]  ;;  %v3149_v48 = vld [vmem:[#allocation8 + $0x24] sm:$0xf0] }
  0x60   :  { %954 = vmatpush.bf16.msrb.mxu3 %v2505_v50  ;;  %v2409_v50 = vor.u32 %v3149_v48, %v2408_v47  ;;  %v3202_v47 = vld [vmem:[#allocation10 + $0xd4] sm:$0xf]  ;;  %v2626_v48 = vld [vmem:[#allocation10 + $0xd8] sm:$0xf0] }
  0x61   :  { %587 = vmatpush.bf16.msrb.mxu0 %v3127_v49  ;;  %v2441_v49 = vor.u32 %v3157_v46, %v2440_v43 }
  0x62   :  { %600 = vmatpush.bf16.msrb.mxu1 %v3135_v52  ;;  %v2442_v52 = vld [vmem:[#allocation8 + $0x68] sm:$0xf0] }
  0x63   :  { %941 = vmatpush.bf16.msrb.mxu2 %v2441_v49  ;;  %v2472_v49 = vld [vmem:[#allocation8 + $0xa0] sm:$0xf] }
  0x65   :  { %588 = vmatpush.bf16.msrb.mxu0 %v3126_v51  ;;  %v3156_v51 = vld [vmem:[#allocation8 + $0x64] sm:$0xf] }
  0x66   :  { %601 = vmatpush.bf16.msrb.mxu1 %v3134_v53  ;;  %v3172_v53 = vld [vmem:[#allocation8 + $0xe4] sm:$0xf]  ;;  %v2445_v54 = vor.u32 %v3156_v51, %v2442_v52  ;;  %v3165_v51 = vld [vmem:[#allocation8 + $0xa4] sm:$0xf0] }
  0x67   :  { %v2509_v58 = vor.u32 %v3172_v53, %v2506_v55  ;;  %942 = vmatpush.bf16.msrb.mxu2 %v2433_v62  ;;  %v3148_v52 = vld [vmem:[#allocation8 + $0x24] sm:$0xf]  ;;  %v2410_v53 = vld [vmem:[#allocation8 + $0x28] sm:$0xf0] }
  0x68   :  { %v2413_v55 = vor.u32 %v3148_v52, %v2410_v53  ;;  %v3188_v52 = vld [vmem:[#allocation10 + $0x64] sm:$0xf]  ;;  %v2570_v53 = vld [vmem:[#allocation10 + $0x68] sm:$0xf0] }
  0x69   :  { %715 = vmatpush.bf16.msra.mxu0 %v704_v26 }
  0x6a   :  { %728 = vmatpush.bf16.msra.mxu1 %v706_v29  ;;  %v2490_v29 = vld [vmem:[#allocation8 + $0xc8] sm:$0xf0] }
  0x6b   :  { %v2493_v31 = vor.u32 %v3168_v28, %v2490_v29  ;;  %v2632_v28 = vld [vmem:[#allocation10 + $0xe0] sm:$0xf]  ;;  %v3205_v29 = vld [vmem:[#allocation10 + $0xe4] sm:$0xf0] }
  0x6c   :  { %v2633_v34 = vor.u32 %v3205_v29, %v2632_v28 }
  0xc5   :  { %v403_v2 = vpop.f32.mrf.mxu0 }
  0xc6   :  { %v404_v3 = vadd.f32 %v403_v2, %v232_v1  ;;  %v416_v4 = vpop.f32.mrf.mxu1  ;;  %v3170_v1 = vld [vmem:[#allocation8 + $0xd4] sm:$0xf]  ;;  %v2498_v2 = vld [vmem:[#allocation8 + $0xd8] sm:$0xf0] }
  0xc8   :  { %v417_v6 = vadd.f32 %v416_v4, %v404_v3  ;;  %v2497_v3 = vor.u32 %v3171_v60, %v2496_v59  ;;  %v2437_v4 = vor.u32 %v3154_v61, %v2434_v63  ;;  %v2477_v59 = vor.u32 %v3164_v56, %v2474_v57  ;;  %v2400_v60 = vld [vmem:[#allocation8 + $0x10] sm:$0xf]  ;;  %v3147_v61 = vld [vmem:[#allocation8 + $0x14] sm:$0xf0]  ;;  %v2616_v56 = vld [vmem:[#allocation10 + $0xc0] sm:$0xf] }
  0xc9   :  { %v2401_v63 = vor.u32 %v3147_v61, %v2400_v60  ;;  %v3201_v57 = vld [vmem:[#allocation10 + $0xc4] sm:$0xf0]  ;;  %v3187_v60 = vld [vmem:[#allocation10 + $0x54] sm:$0xf0]  ;;  %v3186_v61 = vld [vmem:[#allocation10 + $0x54] sm:$0xf] }
  0xca   :  { %v446_v8 = vmul.f32 0.01, %v417_v6  ;;  %955 = vmatpush.bf16.msrb.mxu3 %v2497_v3  ;;  %v3146_v3 = vld [vmem:[#allocation8 + $0x14] sm:$0xf] }
  0xcc   :  { %v448_v9 = vmax.f32 %v417_v6, %v446_v8  ;;  %v2501_v6 = vor.u32 %v3170_v1, %v2498_v2  ;;  %v2464_v1 = vld [vmem:[#allocation8 + $0x90] sm:$0xf]  ;;  %v3163_v2 = vld [vmem:[#allocation8 + $0x94] sm:$0xf0] }
  0xcd   :  { %v429_v10 = vpop.f32.mrf.mxu2  ;;  %v405_v13 = vpop.f32.mrf.mxu0 }
  0xce   :  { %v430_v11 = vadd.f32 %v429_v10, %v233_v7  ;;  %v442_v12 = vpop.f32.mrf.mxu3  ;;  %v450_v14 = vpack.c.bf16 %v448_v9, %v448_v9  ;;  %v418_v15 = vpop.f32.mrf.mxu1  ;;  %v484_v10 = vperm.slane %v3794_v0, 1 }
  0xd0   :  { %v443_v16 = vadd.f32 %v442_v12, %v430_v11  ;;  %589 = vmatmul.bf16.vlgmr.msrb.gmra.mxu0 %v450_v14 }
  0xd1   :  { %966 = vmatpush.bf16.msrb.mxu0 %v2453_v40  ;;  %v3166_v40 = vld [vmem:[#allocation8 + $0xb4] sm:$0xf] }
  0xd2   :  { %v447_v17 = vmul.f32 0.01, %v443_v16  ;;  %v2485_v43 = vor.u32 %v3166_v40, %v2482_v42  ;;  %v2624_v42 = vld [vmem:[#allocation10 + $0xd0] sm:$0xf] }
  0xd4   :  { %v449_v18 = vmax.f32 %v443_v16, %v447_v17 }
  0xd5   :  { %v431_v19 = vpop.f32.mrf.mxu2  ;;  %967 = vmatpush.bf16.msrb.mxu0 %v2445_v54  ;;  %v2473_v54 = vor.u32 %v3165_v51, %v2472_v49  ;;  %v2568_v49 = vld [vmem:[#allocation10 + $0x60] sm:$0xf] }
  0xd6   :  { %v451_v20 = vpack.c.bf16 %v449_v18, %v449_v18  ;;  %v444_v21 = vpop.f32.mrf.mxu3  ;;  %v2424_v19 = vld [vmem:[#allocation8 + $0x40] sm:$0xf] }
  0xd7   :  { %v2488_v21 = vld [vmem:[#allocation8 + $0xc0] sm:$0xf] }
  0xd8   :  { %602 = vmatmul.bf16.vlgmr.msrb.gmra.mxu1 %v451_v20  ;;  %v3153_v20 = vld [vmem:[#allocation8 + $0x44] sm:$0xf0]  ;;  %v2489_v26 = vor.u32 %v3169_v23, %v2488_v21  ;;  %v2458_v21 = vld [vmem:[#allocation8 + $0x88] sm:$0xf0]  ;;  %v2640_v23 = vld [vmem:[#allocation10 + $0xf0] sm:$0xf] }
  0xd9   :  { %979 = vmatpush.bf16.msrb.mxu1 %v2517_v45  ;;  %968 = vmatpush.bf16.msrb.mxu0 %v2437_v4  ;;  %v2425_v22 = vor.u32 %v3153_v20, %v2424_v19  ;;  %v2465_v4 = vor.u32 %v3163_v2, %v2464_v1  ;;  %v3160_v20 = vld [vmem:[#allocation8 + $0x84] sm:$0xf]  ;;  %v2562_v1 = vld [vmem:[#allocation10 + $0x58] sm:$0xf0] }
  0xda   :  { %956 = vmatpush.bf16.msrb.mxu3 %v2489_v26  ;;  %v2641_v26 = vor.u32 %v3207_v24, %v2640_v23  ;;  %v737_v24 = vperm.slane %v3797_v5, 2 }
  0xdb   :  { %943 = vmatpush.bf16.msrb.mxu2 %v2425_v22  ;;  %v2461_v22 = vor.u32 %v3160_v20, %v2458_v21 }
  0xdd   :  { %v3809_v38 = vpop.f32.mrf.mxu2  ;;  %980 = vmatpush.bf16.msrb.mxu1 %v2509_v58  ;;  %969 = vmatpush.bf16.msrb.mxu0 %v2429_v27  ;;  %v2642_v27 = vld [vmem:[#allocation10 + $0xf8] sm:$0xf0] }
  0xde   :  { %v3812_v44 = vpop.f32.mrf.mxu3  ;;  %957 = vmatpush.bf16.msrb.mxu3 %v2481_v36  ;;  %v3190_v36 = vld [vmem:[#allocation10 + $0x74] sm:$0xf] }
  0xe0   :  { %2388 = vmatmul.msk.bf16.vlgmr.msra.gmra.mxu0 %vm619_vm1, %v695_v30 }
  0xe1   :  { %981 = vmatpush.bf16.msrb.mxu1 %v2501_v6  ;;  %970 = vmatpush.bf16.msrb.mxu0 %v2421_v41  ;;  %v2402_v6 = vld [vmem:[#allocation8 + $0x18] sm:$0xf0]  ;;  %v2581_v41 = vor.u32 %v3190_v36, %v2578_v37  ;;  %v3197_v36 = vld [vmem:[#allocation10 + $0xa4] sm:$0xf0]  ;;  %v3196_v37 = vld [vmem:[#allocation10 + $0xa4] sm:$0xf] }
  0xe2   :  { %958 = vmatpush.bf16.msrb.mxu3 %v2473_v54 }
  0xe5   :  { %v639_v7 = vpop.f32.mrf.mxu2  ;;  %982 = vmatpush.bf16.msrb.mxu1 %v2493_v31  ;;  %971 = vmatpush.bf16.msrb.mxu0 %v2413_v55  ;;  %v3204_v31 = vld [vmem:[#allocation10 + $0xe4] sm:$0xf]  ;;  %v2573_v55 = vor.u32 %v3188_v52, %v2570_v53  ;;  %v2594_v53 = vld [vmem:[#allocation10 + $0x98] sm:$0xf0] }
  0xe6   :  { %v652_v8 = vpop.f32.mrf.mxu3  ;;  %v3162_v7 = vld [vmem:[#allocation8 + $0x94] sm:$0xf]  ;;  %959 = vmatpush.bf16.msrb.mxu3 %v2465_v4  ;;  %v2552_v4 = vld [vmem:[#allocation10 + $0x40] sm:$0xf] }
  0xe7   :  { %v2466_v8 = vld [vmem:[#allocation8 + $0x98] sm:$0xf0] }
  0xe8   :  { %2389 = vmatmul.msk.bf16.vlgmr.msra.gmra.mxu1 %vm619_vm1, %v695_v30  ;;  %v2416_v30 = vld [vmem:[#allocation8 + $0x30] sm:$0xf] }
  0xe9   :  { %v2417_v35 = vor.u32 %v3151_v32, %v2416_v30  ;;  %983 = vmatpush.bf16.msrb.mxu1 %v2485_v43  ;;  %v2645_v30 = vor.u32 %v3206_v25, %v2642_v27  ;;  %v2634_v32 = vld [vmem:[#allocation10 + $0xe8] sm:$0xf0]  ;;  %v3203_v43 = vld [vmem:[#allocation10 + $0xd4] sm:$0xf0] }
  0xea   :  { %v2637_v39 = vor.u32 %v3204_v31, %v2634_v32  ;;  %v2625_v54 = vor.u32 %v3203_v43, %v2624_v42  ;;  %v3182_v42 = vld [vmem:[#allocation10 + $0x34] sm:$0xf] }
  0xeb   :  { %944 = vmatpush.bf16.msrb.mxu2 %v2417_v35  ;;  %v3191_v35 = vld [vmem:[#allocation10 + $0x74] sm:$0xf0] }
  0xec   :  { %v2577_v40 = vor.u32 %v3191_v35, %v2576_v33 }
  0xed   :  { %984 = vmatpush.bf16.msrb.mxu1 %v2477_v59  ;;  %v2560_v59 = vld [vmem:[#allocation10 + $0x50] sm:$0xf] }
  0xee   :  { %v2561_v2 = vor.u32 %v3187_v60, %v2560_v59  ;;  %v2538_v59 = vld [vmem:[#allocation10 + $0x28] sm:$0xf0] }
  0xef   :  { %945 = vmatpush.bf16.msrb.mxu2 %v2409_v50  ;;  %v3189_v50 = vld [vmem:[#allocation10 + $0x64] sm:$0xf0] }
  0xf0   :  { %v2569_v51 = vor.u32 %v3189_v50, %v2568_v49  ;;  %v2592_v49 = vld [vmem:[#allocation10 + $0x90] sm:$0xf]  ;;  %v3195_v50 = vld [vmem:[#allocation10 + $0x94] sm:$0xf0] }
  0xf1   :  { %v2593_v52 = vor.u32 %v3195_v50, %v2592_v49  ;;  %v3232_v49 = vld [vmem:[#allocation11 + $0xc4] sm:$0xf]  ;;  %v2746_v50 = vld [vmem:[#allocation11 + $0xc8] sm:$0xf0] }
  0xf3   :  { %946 = vmatpush.bf16.msrb.mxu2 %v2401_v63  ;;  %v2618_v63 = vld [vmem:[#allocation10 + $0xc8] sm:$0xf0] }
 0x14d   :  { %v590_v9 = vpop.f32.mrf.mxu0 }
 0x14e   :  { %v591_v11 = vadd.f32 %v590_v9, %v484_v10  ;;  %v2405_v9 = vor.u32 %v3146_v3, %v2402_v6  ;;  %v2469_v10 = vor.u32 %v3162_v7, %v2466_v8  ;;  %v2565_v3 = vor.u32 %v3186_v61, %v2562_v1  ;;  %v3185_v7 = vld [vmem:[#allocation10 + $0x44] sm:$0xf0]  ;;  %v3184_v8 = vld [vmem:[#allocation10 + $0x44] sm:$0xf]  ;;  %v2584_v61 = vld [vmem:[#allocation10 + $0x80] sm:$0xf] }
 0x14f   :  { %v2617_v6 = vor.u32 %v3201_v57, %v2616_v56  ;;  %v3181_v56 = vld [vmem:[#allocation10 + $0x24] sm:$0xf0]  ;;  %v3180_v57 = vld [vmem:[#allocation10 + $0x24] sm:$0xf] }
 0x150   :  { %972 = vmatpush.bf16.msrb.mxu0 %v2405_v9  ;;  %985 = vmatpush.bf16.msrb.mxu1 %v2469_v10  ;;  %v2554_v9 = vld [vmem:[#allocation10 + $0x48] sm:$0xf0]  ;;  %v2541_v60 = vor.u32 %v3180_v57, %v2538_v59  ;;  %v3192_v1 = vld [vmem:[#allocation10 + $0x84] sm:$0xf]  ;;  %v778_v57 = vperm.slane %v3794_v0, 3 }
 0x154   :  { %986 = vmatpush.bf16.msrb.mxu1 %v2461_v22  ;;  %v736_v22 = vperm.slane %v3794_v0, 2  ;;  %v2688_v0 = vld [vmem:[#allocation11 + $0x50] sm:$0xf] }
 0x155   :  { %v603_v12 = vpop.f32.mrf.mxu1  ;;  %v592_v14 = vpop.f32.mrf.mxu0 }
 0x156   :  { %v604_v13 = vadd.f32 %v603_v12, %v591_v11  ;;  %v2392_v11 = vld [vmem:[#allocation8] sm:$0xf]  ;;  %v3145_v12 = vld [vmem:[#allocation8 + $0x4] sm:$0xf0] }
 0x157   :  { %v2393_v14 = vor.u32 %v3145_v12, %v2392_v11  ;;  %v2608_v11 = vld [vmem:[#allocation10 + $0xb0] sm:$0xf]  ;;  %v3199_v12 = vld [vmem:[#allocation10 + $0xb4] sm:$0xf0] }
 0x158   :  { %v607_v15 = vmul.f32 0.01, %v604_v13  ;;  %1231 = vmatpush.bf16.msra.mxu1 %v2645_v30 }
 0x159   :  { %947 = vmatpush.bf16.msrb.mxu2 %v2393_v14  ;;  %v2610_v14 = vld [vmem:[#allocation10 + $0xb8] sm:$0xf0] }
 0x15a   :  { %v608_v16 = vmax.f32 %v604_v13, %v607_v15  ;;  %v2456_v13 = vld [vmem:[#allocation8 + $0x80] sm:$0xf]  ;;  %v3161_v15 = vld [vmem:[#allocation8 + $0x84] sm:$0xf0] }
 0x15c   :  { %v609_v17 = vpack.c.bf16 %v608_v16, %v608_v16  ;;  %v3144_v16 = vld [vmem:[#allocation8 + $0x4] sm:$0xf]  ;;  %1232 = vmatpush.bf16.msra.mxu1 %v2637_v39  ;;  %v2602_v39 = vld [vmem:[#allocation10 + $0xa8] sm:$0xf0] }
 0x15d   :  { %v605_v18 = vpop.f32.mrf.mxu1  ;;  %v3815_v45 = vpop.f32.mrf.mxu0 }
 0x15e   :  { %2386 = vmatmul.msk.bf16.vlgmr.msra.gmra.mxu2 %vm664_vm2, %v609_v17  ;;  %2387 = vmatmul.msk.bf16.vlgmr.msra.gmra.mxu3 %vm664_vm2, %v609_v17  ;;  %v2394_v17 = vld [vmem:[#allocation8 + $0x8] sm:$0xf0]  ;;  %v2457_v18 = vor.u32 %v3161_v15, %v2456_v13  ;;  %v3198_v13 = vld [vmem:[#allocation10 + $0xb4] sm:$0xf]  ;;  %v2553_v15 = vor.u32 %v3185_v7, %v2552_v4  ;;  %v2528_v4 = vld [vmem:[#allocation10 + $0x10] sm:$0xf] }
 0x15f   :  { %v2397_v19 = vor.u32 %v3144_v16, %v2394_v17  ;;  %1192 = vmatpush.bf16.msra.mxu2 %v2577_v40  ;;  %v2557_v16 = vor.u32 %v3184_v8, %v2554_v9  ;;  %v2609_v17 = vor.u32 %v3199_v12, %v2608_v11  ;;  %v2544_v40 = vld [vmem:[#allocation10 + $0x30] sm:$0xf]  ;;  %v3178_v7 = vld [vmem:[#allocation10 + $0x14] sm:$0xf]  ;;  %v2530_v9 = vld [vmem:[#allocation10 + $0x18] sm:$0xf0] }
 0x160   :  { %960 = vmatpush.bf16.msrb.mxu3 %v2457_v18  ;;  %v2613_v18 = vor.u32 %v3198_v13, %v2610_v14  ;;  %v2520_v11 = vld [vmem:[#allocation10] sm:$0xf]  ;;  %v3177_v12 = vld [vmem:[#allocation10 + $0x4] sm:$0xf0]  ;;  %v3176_v13 = vld [vmem:[#allocation10 + $0x4] sm:$0xf] }
 0x161   :  { %973 = vmatpush.bf16.msrb.mxu0 %v2397_v19  ;;  %v2521_v14 = vor.u32 %v3177_v12, %v2520_v11  ;;  %v3218_v11 = vld [vmem:[#allocation11 + $0x54] sm:$0xf] }
 0x163   :  { %1193 = vmatpush.bf16.msra.mxu2 %v2569_v51  ;;  %v3194_v51 = vld [vmem:[#allocation10 + $0x94] sm:$0xf] }
 0x164   :  { %1205 = vmatpush.bf16.msra.mxu3 %v2641_v26 }
 0x165   :  { %v3817_v46 = vpop.f32.mrf.mxu1  ;;  %v719_v58 = vpop.f32.mrf.mxu0  ;;  %1218 = vmatpush.bf16.msra.mxu0 %v2581_v41  ;;  %v3183_v41 = vld [vmem:[#allocation10 + $0x34] sm:$0xf0] }
 0x166   :  { %v2629_v58 = vor.u32 %v3202_v47, %v2626_v48  ;;  %v2545_v43 = vor.u32 %v3183_v41, %v2544_v40  ;;  %v2546_v47 = vld [vmem:[#allocation10 + $0x38] sm:$0xf0]  ;;  %v2698_v40 = vld [vmem:[#allocation11 + $0x68] sm:$0xf0] }
 0x167   :  { %1194 = vmatpush.bf16.msra.mxu2 %v2561_v2  ;;  %v2549_v48 = vor.u32 %v3182_v42, %v2546_v47  ;;  %v2586_v2 = vld [vmem:[#allocation10 + $0x88] sm:$0xf0]  ;;  %v2744_v47 = vld [vmem:[#allocation11 + $0xc0] sm:$0xf] }
 0x168   :  { %1206 = vmatpush.bf16.msra.mxu3 %v2633_v34  ;;  %1233 = vmatpush.bf16.msra.mxu1 %v2629_v58 }
 0x169   :  { %1219 = vmatpush.bf16.msra.mxu0 %v2573_v55  ;;  %v2536_v55 = vld [vmem:[#allocation10 + $0x20] sm:$0xf] }
 0x16a   :  { %v2537_v58 = vor.u32 %v3181_v56, %v2536_v55 }
 0x16b   :  { %1195 = vmatpush.bf16.msra.mxu2 %v2553_v15  ;;  %v2522_v15 = vld [vmem:[#allocation10 + $0x8] sm:$0xf0] }
 0x16c   :  { %1207 = vmatpush.bf16.msra.mxu3 %v2625_v54  ;;  %v2597_v54 = vor.u32 %v3194_v51, %v2594_v53  ;;  %v779_v53 = vperm.slane %v3797_v5, 3 }
 0x16d   :  { %v732_v62 = vpop.f32.mrf.mxu1  ;;  %1220 = vmatpush.bf16.msra.mxu0 %v2565_v3  ;;  %v2589_v3 = vor.u32 %v3192_v1, %v2586_v2 }
 0x16e   :  { %v3200_v62 = vld [vmem:[#allocation10 + $0xc4] sm:$0xf] }
 0x16f   :  { %v2621_v10 = vor.u32 %v3200_v62, %v2618_v63  ;;  %1196 = vmatpush.bf16.msra.mxu2 %v2545_v43  ;;  %v3193_v62 = vld [vmem:[#allocation10 + $0x84] sm:$0xf0] }
 0x170   :  { %1208 = vmatpush.bf16.msra.mxu3 %v2617_v6  ;;  %v2585_v63 = vor.u32 %v3193_v62, %v2584_v61  ;;  %v3179_v6 = vld [vmem:[#allocation10 + $0x14] sm:$0xf0] }
 0x171   :  { %1234 = vmatpush.bf16.msra.mxu1 %v2621_v10  ;;  %1221 = vmatpush.bf16.msra.mxu0 %v2557_v16  ;;  %v2529_v8 = vor.u32 %v3179_v6, %v2528_v4  ;;  %v2533_v10 = vor.u32 %v3178_v7, %v2530_v9  ;;  %v2525_v16 = vor.u32 %v3176_v13, %v2522_v15  ;;  %v2690_v13 = vld [vmem:[#allocation11 + $0x58] sm:$0xf0]  ;;  %v2736_v15 = vld [vmem:[#allocation11 + $0xb0] sm:$0xf] }
 0x173   :  { %1197 = vmatpush.bf16.msra.mxu2 %v2537_v58 }
 0x174   :  { %1209 = vmatpush.bf16.msra.mxu3 %v2609_v17  ;;  %v2768_v17 = vld [vmem:[#allocation11 + $0xf0] sm:$0xf] }
 0x175   :  { %1235 = vmatpush.bf16.msra.mxu1 %v2613_v18  ;;  %1222 = vmatpush.bf16.msra.mxu0 %v2549_v48  ;;  %v3239_v18 = vld [vmem:[#allocation11 + $0xf4] sm:$0xf0]  ;;  %v3233_v48 = vld [vmem:[#allocation11 + $0xc4] sm:$0xf0] }
 0x176   :  { %v2745_v51 = vor.u32 %v3233_v48, %v2744_v47  ;;  %v3212_v47 = vld [vmem:[#allocation11 + $0x24] sm:$0xf] }
 0x177   :  { %1198 = vmatpush.bf16.msra.mxu2 %v2529_v8 }
 0x179   :  { %1223 = vmatpush.bf16.msra.mxu0 %v2541_v60 }
 0x17b   :  { %1199 = vmatpush.bf16.msra.mxu2 %v2521_v14  ;;  %v2693_v14 = vor.u32 %v3218_v11, %v2690_v13  ;;  %v3269_v11 = vld [vmem:[#allocation13 + $0xe4] sm:$0xf0]  ;;  %v3268_v13 = vld [vmem:[#allocation13 + $0xe4] sm:$0xf] }
 0x17d   :  { %1224 = vmatpush.bf16.msra.mxu0 %v2533_v10  ;;  %v3219_v10 = vld [vmem:[#allocation11 + $0x54] sm:$0xf0] }
 0x17e   :  { %v2689_v12 = vor.u32 %v3219_v10, %v2688_v0  ;;  %v2898_v0 = vld [vmem:[#allocation13 + $0xf8] sm:$0xf0]  ;;  %v2888_v10 = vld [vmem:[#allocation13 + $0xe0] sm:$0xf] }
 0x181   :  { %1225 = vmatpush.bf16.msra.mxu0 %v2525_v16  ;;  %v3231_v16 = vld [vmem:[#allocation11 + $0xb4] sm:$0xf0] }
 0x1e1   :  { %v677_v19 = vpop.f32.mrf.mxu2  ;;  %v690_v20 = vpop.f32.mrf.mxu3 }
 0x1e2   :  { %v678_v21 = vadd.f32 %v677_v19, %v3809_v38  ;;  %v691_v23 = vadd.f32 %v690_v20, %v3812_v44  ;;  %v2600_v44 = vld [vmem:[#allocation10 + $0xa0] sm:$0xf]  ;;  %v3238_v19 = vld [vmem:[#allocation11 + $0xf4] sm:$0xf]  ;;  %v2769_v20 = vor.u32 %v3239_v18, %v2768_v17  ;;  %v2737_v18 = vor.u32 %v3231_v16, %v2736_v15  ;;  %v2832_v15 = vld [vmem:[#allocation13 + $0x70] sm:$0xf] }
 0x1e3   :  { %v3230_v17 = vld [vmem:[#allocation11 + $0xb4] sm:$0xf]  ;;  %v2889_v16 = vor.u32 %v3269_v11, %v2888_v10  ;;  %v2808_v10 = vld [vmem:[#allocation13 + $0x40] sm:$0xf]  ;;  %v3249_v11 = vld [vmem:[#allocation13 + $0x44] sm:$0xf0] }
 0x1e4   :  { %v734_v25 = vadd.f32 %v3815_v45, %v678_v21  ;;  %v735_v26 = vadd.f32 %v3817_v46, %v691_v23  ;;  %v2601_v45 = vor.u32 %v3197_v36, %v2600_v44  ;;  %v2605_v46 = vor.u32 %v3196_v37, %v2602_v39  ;;  %v2770_v21 = vld [vmem:[#allocation11 + $0xf8] sm:$0xf0]  ;;  %v3237_v23 = vld [vmem:[#allocation11 + $0xe4] sm:$0xf0]  ;;  %v3234_v44 = vld [vmem:[#allocation11 + $0xd4] sm:$0xf] }
 0x1e5   :  { %v2754_v36 = vld [vmem:[#allocation11 + $0xd8] sm:$0xf0]  ;;  %v2696_v37 = vld [vmem:[#allocation11 + $0x60] sm:$0xf] }
 0x1e6   :  { %v738_v27 = vadd.f32 %v736_v22, %v734_v25  ;;  %v739_v28 = vadd.f32 %v737_v24, %v735_v26  ;;  %1210 = vmatpush.bf16.msra.mxu3 %v2601_v45  ;;  %1236 = vmatpush.bf16.msra.mxu1 %v2605_v46  ;;  %v2760_v22 = vld [vmem:[#allocation11 + $0xe0] sm:$0xf]  ;;  %v2773_v24 = vor.u32 %v3238_v19, %v2770_v21  ;;  %v3236_v25 = vld [vmem:[#allocation11 + $0xe4] sm:$0xf]  ;;  %v2762_v26 = vld [vmem:[#allocation11 + $0xe8] sm:$0xf0] }
 0x1e7   :  { %v3221_v45 = vld [vmem:[#allocation11 + $0x64] sm:$0xf0]  ;;  %v3220_v46 = vld [vmem:[#allocation11 + $0x64] sm:$0xf]  ;;  %v2757_v43 = vor.u32 %v3234_v44, %v2754_v36  ;;  %v2738_v19 = vld [vmem:[#allocation11 + $0xb8] sm:$0xf0] }
 0x1e8   :  { %v740_v29 = vmul.f32 0.01, %v738_v27  ;;  %v741_v30 = vmul.f32 0.01, %v739_v28  ;;  %v2697_v39 = vor.u32 %v3221_v45, %v2696_v37  ;;  %v2701_v42 = vor.u32 %v3220_v46, %v2698_v40  ;;  %v3217_v21 = vld [vmem:[#allocation11 + $0x44] sm:$0xf0] }
 0x1e9   :  { %v679_v31 = vpop.f32.mrf.mxu2  ;;  %v692_v32 = vpop.f32.mrf.mxu3  ;;  %v2674_v44 = vld [vmem:[#allocation11 + $0x38] sm:$0xf0]  ;;  %v2720_v37 = vld [vmem:[#allocation11 + $0x90] sm:$0xf]  ;;  %v3227_v45 = vld [vmem:[#allocation11 + $0x94] sm:$0xf0] }
 0x1ea   :  { %v742_v33 = vmax.f32 %v738_v27, %v740_v29  ;;  %v743_v38 = vmax.f32 %v739_v28, %v741_v30  ;;  %1211 = vmatpush.bf16.msra.mxu3 %v2593_v52  ;;  %1237 = vmatpush.bf16.msra.mxu1 %v2597_v54  ;;  %v2704_v27 = vld [vmem:[#allocation11 + $0x70] sm:$0xf]  ;;  %v2761_v28 = vor.u32 %v3237_v23, %v2760_v22  ;;  %v3223_v29 = vld [vmem:[#allocation11 + $0x74] sm:$0xf0]  ;;  %v3222_v30 = vld [vmem:[#allocation11 + $0x74] sm:$0xf] }
 0x1eb   :  { %v2706_v31 = vld [vmem:[#allocation11 + $0x78] sm:$0xf0]  ;;  %v2765_v32 = vor.u32 %v3236_v25, %v2762_v26  ;;  %v2749_v52 = vor.u32 %v3232_v49, %v2746_v50  ;;  %v2741_v22 = vor.u32 %v3230_v17, %v2738_v19  ;;  %v2682_v25 = vld [vmem:[#allocation11 + $0x48] sm:$0xf0]  ;;  %v2721_v46 = vor.u32 %v3227_v45, %v2720_v37  ;;  %v3255_v17 = vld [vmem:[#allocation13 + $0x74] sm:$0xf0] }
 0x1ec   :  { %v744_v34 = vpack.c.bf16 %v742_v33, %v742_v33  ;;  %v745_v35 = vpack.c.bf16 %v743_v38, %v743_v38  ;;  %v2705_v33 = vor.u32 %v3223_v29, %v2704_v27  ;;  %v2709_v38 = vor.u32 %v3222_v30, %v2706_v31  ;;  %v2728_v27 = vld [vmem:[#allocation11 + $0xa0] sm:$0xf]  ;;  %v3228_v29 = vld [vmem:[#allocation11 + $0xa4] sm:$0xf]  ;;  %v2730_v31 = vld [vmem:[#allocation11 + $0xa8] sm:$0xf0] }
 0x1ed   :  { %v2722_v40 = vld [vmem:[#allocation11 + $0x98] sm:$0xf0]  ;;  %v2666_v49 = vld [vmem:[#allocation11 + $0x28] sm:$0xf0] }
 0x1ee   :  { %948 = vmatmul.bf16.vlgmr.msrb.gmra.mxu2 %v744_v34  ;;  %961 = vmatmul.bf16.vlgmr.msrb.gmra.mxu3 %v745_v35  ;;  %v2669_v50 = vor.u32 %v3212_v47, %v2666_v49  ;;  %v2834_v19 = vld [vmem:[#allocation13 + $0x78] sm:$0xf0]  ;;  %v3830_v49 = vld [vmem:[#allocation16] sm:$0xff] }
 0x1ef   :  { %974 = vmatmul.bf16.vlgmr.msrb.gmra.mxu0 %v744_v34  ;;  %987 = vmatmul.bf16.vlgmr.msrb.gmra.mxu1 %v745_v35  ;;  %v2752_v34 = vld [vmem:[#allocation11 + $0xd0] sm:$0xf]  ;;  %v3235_v35 = vld [vmem:[#allocation11 + $0xd4] sm:$0xf0] }
 0x1f0   :  { %1212 = vmatpush.bf16.msra.mxu3 %v2585_v63  ;;  %1238 = vmatpush.bf16.msra.mxu1 %v2589_v3  ;;  %v2753_v41 = vor.u32 %v3235_v35, %v2752_v34  ;;  %v3214_v35 = vld [vmem:[#allocation11 + $0x34] sm:$0xf] }
 0x1f1   :  { %1444 = vmatpush.bf16.msrb.mxu2 %v2705_v33  ;;  %1470 = vmatpush.bf16.msrb.mxu0 %v2709_v38  ;;  %v2672_v33 = vld [vmem:[#allocation11 + $0x30] sm:$0xf]  ;;  %v3215_v38 = vld [vmem:[#allocation11 + $0x34] sm:$0xf0]  ;;  %v2677_v36 = vor.u32 %v3214_v35, %v2674_v44  ;;  %v3265_v35 = vld [vmem:[#allocation13 + $0xc4] sm:$0xf0] }
 0x1f2   :  { %v2673_v34 = vor.u32 %v3215_v38, %v2672_v33  ;;  %v3264_v44 = vld [vmem:[#allocation13 + $0xc4] sm:$0xf] }
 0x1f4   :  { %1457 = vmatpush.bf16.msrb.mxu3 %v2769_v20  ;;  %1483 = vmatpush.bf16.msrb.mxu1 %v2773_v24  ;;  %v2680_v20 = vld [vmem:[#allocation11 + $0x40] sm:$0xf]  ;;  %v3216_v24 = vld [vmem:[#allocation11 + $0x44] sm:$0xf] }
 0x1f5   :  { %1445 = vmatpush.bf16.msrb.mxu2 %v2697_v39  ;;  %1471 = vmatpush.bf16.msrb.mxu0 %v2701_v42  ;;  %v2681_v23 = vor.u32 %v3217_v21, %v2680_v20  ;;  %v2685_v26 = vor.u32 %v3216_v24, %v2682_v25  ;;  %v3226_v39 = vld [vmem:[#allocation11 + $0x94] sm:$0xf]  ;;  %v2664_v42 = vld [vmem:[#allocation11 + $0x20] sm:$0xf]  ;;  %v2833_v21 = vor.u32 %v3255_v17, %v2832_v15  ;;  %v3267_v24 = vld [vmem:[#allocation13 + $0xd4] sm:$0xf0] }
 0x1f6   :  { %v3266_v25 = vld [vmem:[#allocation13 + $0xd4] sm:$0xf]  ;;  %v2810_v15 = vld [vmem:[#allocation13 + $0x48] sm:$0xf0]  ;;  %v2856_v17 = vld [vmem:[#allocation13 + $0xa0] sm:$0xf] }
 0x1f8   :  { %1458 = vmatpush.bf16.msrb.mxu3 %v2761_v28  ;;  %1484 = vmatpush.bf16.msrb.mxu1 %v2765_v32  ;;  %v3229_v28 = vld [vmem:[#allocation11 + $0xa4] sm:$0xf0]  ;;  %v2733_v32 = vor.u32 %v3228_v29, %v2730_v31  ;;  %v2826_v31 = vld [vmem:[#allocation13 + $0x68] sm:$0xf0] }
 0x1f9   :  { %1446 = vmatpush.bf16.msrb.mxu2 %v2689_v12  ;;  %1472 = vmatpush.bf16.msrb.mxu0 %v2693_v14  ;;  %v2729_v30 = vor.u32 %v3229_v28, %v2728_v27  ;;  %v2890_v14 = vld [vmem:[#allocation13 + $0xe8] sm:$0xf0]  ;;  %v2824_v27 = vld [vmem:[#allocation13 + $0x60] sm:$0xf]  ;;  %v3253_v28 = vld [vmem:[#allocation13 + $0x64] sm:$0xf0] }
 0x1fa   :  { %v2893_v20 = vor.u32 %v3268_v13, %v2890_v14  ;;  %v2825_v29 = vor.u32 %v3253_v28, %v2824_v27  ;;  %v2809_v13 = vor.u32 %v3249_v11, %v2808_v10  ;;  %v3248_v14 = vld [vmem:[#allocation13 + $0x44] sm:$0xf]  ;;  %v2802_v27 = vld [vmem:[#allocation13 + $0x38] sm:$0xf0]  ;;  %v3286_v10 = vld [vmem:[#allocation14 + $0x74] sm:$0xf] }
 0x1fb   :  { %v2962_v11 = vld [vmem:[#allocation14 + $0x78] sm:$0xf0] }
 0x1fc   :  { %1459 = vmatpush.bf16.msrb.mxu3 %v2753_v41  ;;  %1485 = vmatpush.bf16.msrb.mxu1 %v2757_v43  ;;  %v2725_v41 = vor.u32 %v3226_v39, %v2722_v40  ;;  %v3213_v43 = vld [vmem:[#allocation11 + $0x24] sm:$0xf0] }
 0x1fd   :  { %1447 = vmatpush.bf16.msrb.mxu2 %v2681_v23  ;;  %1473 = vmatpush.bf16.msrb.mxu0 %v2685_v26  ;;  %v2665_v48 = vor.u32 %v3213_v43, %v2664_v42  ;;  %v2880_v23 = vld [vmem:[#allocation13 + $0xd0] sm:$0xf]  ;;  %v2882_v26 = vld [vmem:[#allocation13 + $0xd8] sm:$0xf0]  ;;  %v3827_v39 = vld [vmem:[#allocation16 + $0x8] sm:$0xff] }
 0x1fe   :  { %v2885_v38 = vor.u32 %v3266_v25, %v2882_v26  ;;  %v3246_v26 = vld [vmem:[#allocation13 + $0x34] sm:$0xf] }
 0x1ff   :  { %v2805_v28 = vor.u32 %v3246_v26, %v2802_v27  ;;  %v3000_v27 = vld [vmem:[#allocation14 + $0xc0] sm:$0xf] }
 0x200   :  { %1460 = vmatpush.bf16.msrb.mxu3 %v2745_v51  ;;  %1486 = vmatpush.bf16.msrb.mxu1 %v2749_v52  ;;  %v2712_v51 = vld [vmem:[#allocation11 + $0x80] sm:$0xf]  ;;  %v3225_v52 = vld [vmem:[#allocation11 + $0x84] sm:$0xf0] }
 0x201   :  { %1448 = vmatpush.bf16.msrb.mxu2 %v2673_v34  ;;  %1474 = vmatpush.bf16.msrb.mxu0 %v2677_v36  ;;  %v2872_v34 = vld [vmem:[#allocation13 + $0xc0] sm:$0xf]  ;;  %v2874_v36 = vld [vmem:[#allocation13 + $0xc8] sm:$0xf0] }
 0x202   :  { %v2873_v45 = vor.u32 %v3265_v35, %v2872_v34  ;;  %v2877_v40 = vor.u32 %v3264_v44, %v2874_v36  ;;  %v2792_v34 = vld [vmem:[#allocation13 + $0x20] sm:$0xf]  ;;  %v3245_v35 = vld [vmem:[#allocation13 + $0x24] sm:$0xf0]  ;;  %v3244_v44 = vld [vmem:[#allocation13 + $0x24] sm:$0xf] }
 0x203   :  { %v2793_v36 = vor.u32 %v3245_v35, %v2792_v34 }
 0x204   :  { %1461 = vmatpush.bf16.msrb.mxu3 %v2737_v18  ;;  %1487 = vmatpush.bf16.msrb.mxu1 %v2741_v22  ;;  %v3254_v18 = vld [vmem:[#allocation13 + $0x74] sm:$0xf] }
 0x205   :  { %1449 = vmatpush.bf16.msrb.mxu2 %v2665_v48  ;;  %1475 = vmatpush.bf16.msrb.mxu0 %v2669_v50  ;;  %v2837_v22 = vor.u32 %v3254_v18, %v2834_v19  ;;  %v1030_v50 = vperm.slane %v3830_v49, 4  ;;  %v3261_v18 = vld [vmem:[#allocation13 + $0xa4] sm:$0xf0]  ;;  %v3260_v19 = vld [vmem:[#allocation13 + $0xa4] sm:$0xf] }
 0x208   :  { %1462 = vmatpush.bf16.msrb.mxu3 %v2729_v30  ;;  %1488 = vmatpush.bf16.msrb.mxu1 %v2733_v32  ;;  %v3252_v30 = vld [vmem:[#allocation13 + $0x64] sm:$0xf]  ;;  %v2881_v32 = vor.u32 %v3267_v24, %v2880_v23  ;;  %v2800_v23 = vld [vmem:[#allocation13 + $0x30] sm:$0xf]  ;;  %v3247_v24 = vld [vmem:[#allocation13 + $0x34] sm:$0xf0] }
 0x209   :  { %v2829_v33 = vor.u32 %v3252_v30, %v2826_v31  ;;  %v2801_v25 = vor.u32 %v3247_v24, %v2800_v23  ;;  %v3259_v30 = vld [vmem:[#allocation13 + $0x94] sm:$0xf0]  ;;  %v3258_v31 = vld [vmem:[#allocation13 + $0x94] sm:$0xf]  ;;  %v2954_v23 = vld [vmem:[#allocation14 + $0x68] sm:$0xf0] }
 0x20c   :  { %1463 = vmatpush.bf16.msrb.mxu3 %v2721_v46  ;;  %1489 = vmatpush.bf16.msrb.mxu1 %v2725_v41  ;;  %v1031_v46 = vperm.slane %v3827_v39, 4 }
 0x26c   :  { %v975_v54 = vpop.f32.mrf.mxu0  ;;  %v988_v55 = vpop.f32.mrf.mxu1 }
 0x26d   :  { %v976_v56 = vadd.f32 %v975_v54, %v779_v53  ;;  %v2713_v53 = vor.u32 %v3225_v52, %v2712_v51  ;;  %v3224_v54 = vld [vmem:[#allocation11 + $0x84] sm:$0xf] }
 0x26f   :  { %v989_v58 = vadd.f32 %v988_v55, %v976_v56  ;;  %v2714_v55 = vld [vmem:[#allocation11 + $0x88] sm:$0xf0]  ;;  %1464 = vmatpush.bf16.msrb.mxu3 %v2713_v53 }
 0x270   :  { %v2717_v56 = vor.u32 %v3224_v54, %v2714_v55 }
 0x271   :  { %v993_v59 = vmul.f32 0.01, %v989_v58  ;;  %v949_v60 = vpop.f32.mrf.mxu2  ;;  %v962_v61 = vpop.f32.mrf.mxu3 }
 0x272   :  { %v950_v62 = vadd.f32 %v949_v60, %v778_v57  ;;  %v2656_v57 = vld [vmem:[#allocation11 + $0x10] sm:$0xf]  ;;  %1490 = vmatpush.bf16.msrb.mxu1 %v2717_v56 }
 0x273   :  { %v995_v63 = vmax.f32 %v989_v58, %v993_v59  ;;  %v3211_v58 = vld [vmem:[#allocation11 + $0x14] sm:$0xf0]  ;;  %v3210_v59 = vld [vmem:[#allocation11 + $0x14] sm:$0xf] }
 0x274   :  { %v963_v1 = vadd.f32 %v962_v61, %v950_v62  ;;  %v977_v2 = vpop.f32.mrf.mxu0  ;;  %v990_v3 = vpop.f32.mrf.mxu1  ;;  %v2657_v60 = vor.u32 %v3211_v58, %v2656_v57  ;;  %v2658_v61 = vld [vmem:[#allocation11 + $0x18] sm:$0xf0] }
 0x275   :  { %v997_v4 = vpack.c.bf16 %v995_v63, %v995_v63  ;;  %v2661_v62 = vor.u32 %v3210_v59, %v2658_v61  ;;  %v2648_v63 = vld [vmem:[#allocation11] sm:$0xf]  ;;  %v3208_v2 = vld [vmem:[#allocation11 + $0x4] sm:$0xf] }
 0x276   :  { %v992_v6 = vmul.f32 0.01, %v963_v1  ;;  %1450 = vmatpush.bf16.msrb.mxu2 %v2657_v60 }
 0x277   :  { %1213 = vmatmul.bf16.vlgmr.msra.gmra.mxu3 %v997_v4  ;;  %1239 = vmatmul.bf16.vlgmr.msra.gmra.mxu1 %v997_v4  ;;  %v2650_v4 = vld [vmem:[#allocation11 + $0x8] sm:$0xf0] }
 0x278   :  { %v994_v5 = vmax.f32 %v963_v1, %v992_v6  ;;  %1476 = vmatpush.bf16.msrb.mxu0 %v2661_v62  ;;  %v3209_v1 = vld [vmem:[#allocation11 + $0x4] sm:$0xf0]  ;;  %v2653_v6 = vor.u32 %v3208_v2, %v2650_v4  ;;  %v3250_v2 = vld [vmem:[#allocation13 + $0x54] sm:$0xf]  ;;  %v2818_v4 = vld [vmem:[#allocation13 + $0x58] sm:$0xf0] }
 0x279   :  { %v951_v7 = vpop.f32.mrf.mxu2  ;;  %v964_v8 = vpop.f32.mrf.mxu3  ;;  %v2649_v3 = vor.u32 %v3209_v1, %v2648_v63  ;;  %v2816_v63 = vld [vmem:[#allocation13 + $0x50] sm:$0xf]  ;;  %v3251_v1 = vld [vmem:[#allocation13 + $0x54] sm:$0xf0] }
 0x27a   :  { %v996_v9 = vpack.c.bf16 %v994_v5, %v994_v5  ;;  %v2896_v5 = vld [vmem:[#allocation13 + $0xf0] sm:$0xf]  ;;  %v3271_v7 = vld [vmem:[#allocation13 + $0xf4] sm:$0xf0]  ;;  %v3270_v8 = vld [vmem:[#allocation13 + $0xf4] sm:$0xf] }
 0x27b   :  { %1451 = vmatpush.bf16.msrb.mxu2 %v2649_v3  ;;  %v2901_v12 = vor.u32 %v3270_v8, %v2898_v0  ;;  %v2817_v3 = vor.u32 %v3251_v1, %v2816_v63  ;;  %v3262_v8 = vld [vmem:[#allocation13 + $0xb4] sm:$0xf]  ;;  %v2866_v0 = vld [vmem:[#allocation13 + $0xb8] sm:$0xf0] }
 0x27c   :  { %1200 = vmatmul.bf16.vlgmr.msra.gmra.mxu2 %v996_v9  ;;  %1226 = vmatmul.bf16.vlgmr.msra.gmra.mxu0 %v996_v9  ;;  %v2897_v9 = vor.u32 %v3271_v7, %v2896_v5  ;;  %v2864_v5 = vld [vmem:[#allocation13 + $0xb0] sm:$0xf]  ;;  %v3263_v7 = vld [vmem:[#allocation13 + $0xb4] sm:$0xf0]  ;;  %v3302_v63 = vld [vmem:[#allocation14 + $0xf4] sm:$0xf] }
 0x27d   :  { %1477 = vmatpush.bf16.msrb.mxu0 %v2653_v6  ;;  %1735 = vmatpush.bf16.msra.mxu1 %v2901_v12  ;;  %v2821_v6 = vor.u32 %v3250_v2, %v2818_v4  ;;  %v2869_v12 = vor.u32 %v3262_v8, %v2866_v0  ;;  %v3026_v2 = vld [vmem:[#allocation14 + $0xf8] sm:$0xf0]  ;;  %v3301_v4 = vld [vmem:[#allocation14 + $0xe4] sm:$0xf0]  ;;  %v2960_v8 = vld [vmem:[#allocation14 + $0x70] sm:$0xf] }
 0x27e   :  { %1709 = vmatpush.bf16.msra.mxu3 %v2897_v9  ;;  %v2865_v9 = vor.u32 %v3263_v7, %v2864_v5  ;;  %v3300_v5 = vld [vmem:[#allocation14 + $0xe4] sm:$0xf]  ;;  %v3018_v7 = vld [vmem:[#allocation14 + $0xe8] sm:$0xf0]  ;;  %v3287_v0 = vld [vmem:[#allocation14 + $0x74] sm:$0xf0] }
 0x27f   :  { %1696 = vmatpush.bf16.msra.mxu2 %v2833_v21  ;;  %v2858_v21 = vld [vmem:[#allocation13 + $0xa8] sm:$0xf0] }
 0x281   :  { %1722 = vmatpush.bf16.msra.mxu0 %v2837_v22  ;;  %1736 = vmatpush.bf16.msra.mxu1 %v2893_v20  ;;  %v2857_v20 = vor.u32 %v3261_v18, %v2856_v17  ;;  %v2861_v22 = vor.u32 %v3260_v19, %v2858_v21  ;;  %v3298_v17 = vld [vmem:[#allocation14 + $0xd4] sm:$0xf]  ;;  %v3010_v18 = vld [vmem:[#allocation14 + $0xd8] sm:$0xf0]  ;;  %v2952_v19 = vld [vmem:[#allocation14 + $0x60] sm:$0xf] }
 0x282   :  { %1710 = vmatpush.bf16.msra.mxu3 %v2889_v16  ;;  %v2813_v16 = vor.u32 %v3248_v14, %v2810_v15  ;;  %v2965_v14 = vor.u32 %v3286_v10, %v2962_v11  ;;  %v3008_v15 = vld [vmem:[#allocation14 + $0xd0] sm:$0xf]  ;;  %v3013_v26 = vor.u32 %v3298_v17, %v3010_v18  ;;  %v3293_v10 = vld [vmem:[#allocation14 + $0xa4] sm:$0xf0]  ;;  %v3292_v11 = vld [vmem:[#allocation14 + $0xa4] sm:$0xf] }
 0x283   :  { %1697 = vmatpush.bf16.msra.mxu2 %v2825_v29  ;;  %v2848_v29 = vld [vmem:[#allocation13 + $0x90] sm:$0xf]  ;;  %v3278_v18 = vld [vmem:[#allocation14 + $0x34] sm:$0xf] }
 0x285   :  { %1723 = vmatpush.bf16.msra.mxu0 %v2829_v33  ;;  %1737 = vmatpush.bf16.msra.mxu1 %v2885_v38  ;;  %v2850_v33 = vld [vmem:[#allocation13 + $0x98] sm:$0xf0] }
 0x286   :  { %1711 = vmatpush.bf16.msra.mxu3 %v2881_v32  ;;  %v2849_v32 = vor.u32 %v3259_v30, %v2848_v29  ;;  %v2853_v38 = vor.u32 %v3258_v31, %v2850_v33  ;;  %v3296_v30 = vld [vmem:[#allocation14 + $0xc4] sm:$0xf]  ;;  %v3002_v31 = vld [vmem:[#allocation14 + $0xc8] sm:$0xf0]  ;;  %v1283_v33 = vperm.slane %v3827_v39, 5 }
 0x287   :  { %1698 = vmatpush.bf16.msra.mxu2 %v2817_v3  ;;  %v3016_v3 = vld [vmem:[#allocation14 + $0xe0] sm:$0xf] }
 0x289   :  { %1738 = vmatpush.bf16.msra.mxu1 %v2877_v40  ;;  %1724 = vmatpush.bf16.msra.mxu0 %v2821_v6  ;;  %v3257_v40 = vld [vmem:[#allocation13 + $0x84] sm:$0xf0]  ;;  %v3029_v6 = vor.u32 %v3302_v63, %v3026_v2  ;;  %v3294_v63 = vld [vmem:[#allocation14 + $0xb4] sm:$0xf]  ;;  %v2994_v2 = vld [vmem:[#allocation14 + $0xb8] sm:$0xf0] }
 0x28a   :  { %1712 = vmatpush.bf16.msra.mxu3 %v2873_v45 }
 0x28b   :  { %1699 = vmatpush.bf16.msra.mxu2 %v2809_v13  ;;  %v2961_v13 = vor.u32 %v3287_v0, %v2960_v8  ;;  %v2938_v8 = vld [vmem:[#allocation14 + $0x48] sm:$0xf0]  ;;  %v2984_v0 = vld [vmem:[#allocation14 + $0xa0] sm:$0xf] }
 0x28d   :  { %1739 = vmatpush.bf16.msra.mxu1 %v2869_v12  ;;  %1725 = vmatpush.bf16.msra.mxu0 %v2813_v16  ;;  %v3021_v12 = vor.u32 %v3300_v5, %v3018_v7  ;;  %v3299_v16 = vld [vmem:[#allocation14 + $0xd4] sm:$0xf0]  ;;  %v3280_v7 = vld [vmem:[#allocation14 + $0x44] sm:$0xf] }
 0x28e   :  { %1713 = vmatpush.bf16.msra.mxu3 %v2865_v9  ;;  %v3017_v9 = vor.u32 %v3301_v4, %v3016_v3  ;;  %v3009_v24 = vor.u32 %v3299_v16, %v3008_v15  ;;  %v2936_v3 = vld [vmem:[#allocation14 + $0x40] sm:$0xf]  ;;  %v3281_v4 = vld [vmem:[#allocation14 + $0x44] sm:$0xf0]  ;;  %v2928_v15 = vld [vmem:[#allocation14 + $0x30] sm:$0xf] }
 0x28f   :  { %1700 = vmatpush.bf16.msra.mxu2 %v2801_v25  ;;  %v2937_v5 = vor.u32 %v3281_v4, %v2936_v3  ;;  %v3279_v16 = vld [vmem:[#allocation14 + $0x34] sm:$0xf0]  ;;  %v1534_v3 = vperm.slane %v3830_v49, 6 }
 0x290   :  { %v2929_v17 = vor.u32 %v3279_v16, %v2928_v15  ;;  %v3309_v15 = vld [vmem:[%s3903_s13 + $0x28] sm:$0xff]  ;;  %v3315_v16 = vld [vmem:[%s3903_s13 + $0x58] sm:$0xff] }
 0x291   :  { %1740 = vmatpush.bf16.msra.mxu1 %v2861_v22  ;;  %1726 = vmatpush.bf16.msra.mxu0 %v2805_v28  ;;  %v3284_v22 = vld [vmem:[#allocation14 + $0x64] sm:$0xf]  ;;  %v3297_v28 = vld [vmem:[#allocation14 + $0xc4] sm:$0xf0] }
 0x292   :  { %1714 = vmatpush.bf16.msra.mxu3 %v2857_v20  ;;  %v3285_v20 = vld [vmem:[#allocation14 + $0x64] sm:$0xf0]  ;;  %v2957_v25 = vor.u32 %v3284_v22, %v2954_v23  ;;  %v3291_v22 = vld [vmem:[#allocation14 + $0x94] sm:$0xf0]  ;;  %v3290_v23 = vld [vmem:[#allocation14 + $0x94] sm:$0xf] }
 0x293   :  { %1701 = vmatpush.bf16.msra.mxu2 %v2793_v36  ;;  %v2953_v21 = vor.u32 %v3285_v20, %v2952_v19  ;;  %v2930_v19 = vld [vmem:[#allocation14 + $0x38] sm:$0xf0] }
 0x294   :  { %v2933_v20 = vor.u32 %v3278_v18, %v2930_v19  ;;  %v3314_v18 = vld [vmem:[%s3903_s13 + $0x50] sm:$0xff]  ;;  %v3307_v19 = vld [vmem:[%s3903_s13 + $0x18] sm:$0xff] }
 0x295   :  { %1741 = vmatpush.bf16.msra.mxu1 %v2853_v38  ;;  %v3005_v38 = vor.u32 %v3296_v30, %v3002_v31  ;;  %v2922_v31 = vld [vmem:[#allocation14 + $0x28] sm:$0xf0] }
 0x296   :  { %1715 = vmatpush.bf16.msra.mxu3 %v2849_v32  ;;  %v3001_v32 = vor.u32 %v3297_v28, %v3000_v27  ;;  %v2920_v27 = vld [vmem:[#allocation14 + $0x20] sm:$0xf]  ;;  %v3277_v28 = vld [vmem:[#allocation14 + $0x24] sm:$0xf0] }
 0x297   :  { %v2921_v30 = vor.u32 %v3277_v28, %v2920_v27 }
 0x2f4   :  { %v1240_v37 = vpop.f32.mrf.mxu1 }
 0x2f9   :  { %v1227_v41 = vpop.f32.mrf.mxu0 }
 0x2fa   :  { %v1214_v42 = vpop.f32.mrf.mxu3  ;;  %v1228_v43 = vadd.f32 %v1227_v41, %v1031_v46  ;;  %v2840_v46 = vld [vmem:[#allocation13 + $0x80] sm:$0xf] }
 0x2fb   :  { %v2841_v41 = vor.u32 %v3257_v40, %v2840_v46 }
 0x2fc   :  { %v1241_v47 = vadd.f32 %v1240_v37, %v1228_v43  ;;  %v1242_v48 = vpop.f32.mrf.mxu1  ;;  %v2794_v37 = vld [vmem:[#allocation13 + $0x28] sm:$0xf0] }
 0x2fd   :  { %v2797_v45 = vor.u32 %v3244_v44, %v2794_v37  ;;  %v2842_v43 = vld [vmem:[#allocation13 + $0x88] sm:$0xf0]  ;;  %v2784_v48 = vld [vmem:[#allocation13 + $0x10] sm:$0xf]  ;;  %1716 = vmatpush.bf16.msra.mxu3 %v2841_v41 }
 0x2fe   :  { %v1245_v51 = vmul.f32 0.01, %v1241_v47 }
 0x2ff   :  { %v1201_v52 = vpop.f32.mrf.mxu2  ;;  %1727 = vmatpush.bf16.msra.mxu0 %v2797_v45  ;;  %v1282_v45 = vperm.slane %v3830_v49, 5 }
 0x300   :  { %v1247_v53 = vmax.f32 %v1241_v47, %v1245_v51  ;;  %v1202_v54 = vadd.f32 %v1201_v52, %v1030_v50  ;;  %v3243_v50 = vld [vmem:[#allocation13 + $0x14] sm:$0xf0]  ;;  %v3242_v51 = vld [vmem:[#allocation13 + $0x14] sm:$0xf] }
 0x301   :  { %v1229_v55 = vpop.f32.mrf.mxu0  ;;  %v2785_v52 = vor.u32 %v3243_v50, %v2784_v48 }
 0x302   :  { %v1249_v56 = vpack.c.bf16 %v1247_v53, %v1247_v53  ;;  %v1215_v57 = vadd.f32 %v1214_v42, %v1202_v54  ;;  %v1216_v58 = vpop.f32.mrf.mxu3  ;;  %v3256_v42 = vld [vmem:[#allocation13 + $0x84] sm:$0xf]  ;;  %v2786_v53 = vld [vmem:[#allocation13 + $0x18] sm:$0xf0]  ;;  %v2776_v55 = vld [vmem:[#allocation13] sm:$0xf] }
 0x303   :  { %v2845_v47 = vor.u32 %v3256_v42, %v2842_v43  ;;  %v2789_v54 = vor.u32 %v3242_v51, %v2786_v53  ;;  %1702 = vmatpush.bf16.msra.mxu2 %v2785_v52 }
 0x304   :  { %v1244_v59 = vmul.f32 0.01, %v1215_v57  ;;  %1465 = vmatmul.bf16.vlgmr.msrb.gmra.mxu3 %v1249_v56  ;;  %1491 = vmatmul.bf16.vlgmr.msrb.gmra.mxu1 %v1249_v56  ;;  %v3241_v56 = vld [vmem:[#allocation13 + $0x4] sm:$0xf0] }
 0x305   :  { %1742 = vmatpush.bf16.msra.mxu1 %v2845_v47  ;;  %1728 = vmatpush.bf16.msra.mxu0 %v2789_v54  ;;  %v2777_v58 = vor.u32 %v3241_v56, %v2776_v55  ;;  %v2944_v55 = vld [vmem:[#allocation14 + $0x50] sm:$0xf]  ;;  %v3283_v56 = vld [vmem:[#allocation14 + $0x54] sm:$0xf0] }
 0x306   :  { %v1246_v60 = vmax.f32 %v1215_v57, %v1244_v59  ;;  %v3240_v57 = vld [vmem:[#allocation13 + $0x4] sm:$0xf]  ;;  %v2778_v59 = vld [vmem:[#allocation13 + $0x8] sm:$0xf0] }
 0x307   :  { %v1203_v61 = vpop.f32.mrf.mxu2  ;;  %1703 = vmatpush.bf16.msra.mxu2 %v2777_v58  ;;  %v2945_v58 = vor.u32 %v3283_v56, %v2944_v55  ;;  %v3318_v55 = vld [vmem:[%s3903_s13 + $0x70] sm:$0xff] }
 0x308   :  { %v1248_v62 = vpack.c.bf16 %v1246_v60, %v1246_v60  ;;  %v2781_v60 = vor.u32 %v3240_v57, %v2778_v59  ;;  %v3024_v61 = vld [vmem:[#allocation14 + $0xf0] sm:$0xf]  ;;  %v3282_v57 = vld [vmem:[#allocation14 + $0x54] sm:$0xf]  ;;  %v2946_v59 = vld [vmem:[#allocation14 + $0x58] sm:$0xf0] }
 0x309   :  { %1987 = vmatpush.bf16.msrb.mxu1 %v3029_v6  ;;  %v2997_v6 = vor.u32 %v3294_v63, %v2994_v2  ;;  %v3310_v56 = vld [vmem:[%s3903_s13 + $0x30] sm:$0xff] }
 0x30a   :  { %1452 = vmatmul.bf16.vlgmr.msrb.gmra.mxu2 %v1248_v62  ;;  %1478 = vmatmul.bf16.vlgmr.msrb.gmra.mxu0 %v1248_v62  ;;  %v3303_v62 = vld [vmem:[#allocation14 + $0xf4] sm:$0xf0] }
 0x30b   :  { %1729 = vmatpush.bf16.msra.mxu0 %v2781_v60  ;;  %v3025_v1 = vor.u32 %v3303_v62, %v3024_v61  ;;  %1948 = vmatpush.bf16.msrb.mxu2 %v2961_v13  ;;  %v2949_v60 = vor.u32 %v3282_v57, %v2946_v59  ;;  %v2992_v61 = vld [vmem:[#allocation14 + $0xb0] sm:$0xf]  ;;  %v3295_v62 = vld [vmem:[#allocation14 + $0xb4] sm:$0xf0]  ;;  %v2986_v13 = vld [vmem:[#allocation14 + $0xa8] sm:$0xf0] }
 0x30c   :  { %v3317_v57 = vld [vmem:[%s3903_s13 + $0x68] sm:$0xff]  ;;  %v3316_v59 = vld [vmem:[%s3903_s13 + $0x60] sm:$0xff] }
 0x30d   :  { %1961 = vmatpush.bf16.msrb.mxu3 %v3025_v1  ;;  %1988 = vmatpush.bf16.msrb.mxu1 %v3021_v12  ;;  %v2993_v1 = vor.u32 %v3295_v62, %v2992_v61  ;;  %v2985_v12 = vor.u32 %v3293_v10, %v2984_v0 }
 0x30f   :  { %1974 = vmatpush.bf16.msrb.mxu0 %v2965_v14  ;;  %1949 = vmatpush.bf16.msrb.mxu2 %v2953_v21  ;;  %v2989_v14 = vor.u32 %v3292_v11, %v2986_v13  ;;  %v2976_v21 = vld [vmem:[#allocation14 + $0x90] sm:$0xf] }
 0x311   :  { %1962 = vmatpush.bf16.msrb.mxu3 %v3017_v9  ;;  %1989 = vmatpush.bf16.msrb.mxu1 %v3013_v26  ;;  %v2941_v9 = vor.u32 %v3280_v7, %v2938_v8 }
 0x313   :  { %1975 = vmatpush.bf16.msrb.mxu0 %v2957_v25  ;;  %1950 = vmatpush.bf16.msrb.mxu2 %v2945_v58  ;;  %v2978_v25 = vld [vmem:[#allocation14 + $0x98] sm:$0xf0] }
 0x314   :  { %v2981_v26 = vor.u32 %v3290_v23, %v2978_v25  ;;  %v3305_v23 = vld [vmem:[%s3903_s13 + $0x8] sm:$0xff] }
 0x315   :  { %1963 = vmatpush.bf16.msrb.mxu3 %v3009_v24  ;;  %1990 = vmatpush.bf16.msrb.mxu1 %v3005_v38  ;;  %v2977_v24 = vor.u32 %v3291_v22, %v2976_v21  ;;  %v3289_v38 = vld [vmem:[#allocation14 + $0x84] sm:$0xf0]  ;;  %v3312_v22 = vld [vmem:[%s3903_s13 + $0x40] sm:$0xff] }
 0x316   :  { %v3306_v21 = vld [vmem:[%s3903_s13 + $0x10] sm:$0xff] }
 0x317   :  { %1976 = vmatpush.bf16.msrb.mxu0 %v2949_v60  ;;  %1951 = vmatpush.bf16.msrb.mxu2 %v2937_v5  ;;  %v1535_v60 = vperm.slane %v3827_v39, 6 }
 0x319   :  { %1964 = vmatpush.bf16.msrb.mxu3 %v3001_v32  ;;  %1991 = vmatpush.bf16.msrb.mxu1 %v2997_v6 }
 0x31b   :  { %1977 = vmatpush.bf16.msrb.mxu0 %v2941_v9  ;;  %1952 = vmatpush.bf16.msrb.mxu2 %v2929_v17  ;;  %v3308_v17 = vld [vmem:[%s3903_s13 + $0x20] sm:$0xff] }
 0x31d   :  { %1965 = vmatpush.bf16.msrb.mxu3 %v2993_v1  ;;  %1992 = vmatpush.bf16.msrb.mxu1 %v2989_v14 }
 0x31f   :  { %1978 = vmatpush.bf16.msrb.mxu0 %v2933_v20  ;;  %1953 = vmatpush.bf16.msrb.mxu2 %v2921_v30  ;;  %v3313_v20 = vld [vmem:[%s3903_s13 + $0x48] sm:$0xff] }
 0x321   :  { %1966 = vmatpush.bf16.msrb.mxu3 %v2985_v12  ;;  %1993 = vmatpush.bf16.msrb.mxu1 %v2981_v26  ;;  %v1787_v26 = vperm.slane %v3827_v39, 7 }
 0x325   :  { %1967 = vmatpush.bf16.msrb.mxu3 %v2977_v24  ;;  %v3304_v24 = vld [vmem:[%s3903_s13] sm:$0xff] }
 0x381   :  { %v1492_v29 = vpop.f32.mrf.mxu1 }
 0x387   :  { %v1466_v34 = vpop.f32.mrf.mxu3  ;;  %v1479_v35 = vpop.f32.mrf.mxu0 }
 0x388   :  { %v1480_v44 = vadd.f32 %v1479_v35, %v1283_v33  ;;  %v2968_v33 = vld [vmem:[#allocation14 + $0x80] sm:$0xf]  ;;  %v3288_v35 = vld [vmem:[#allocation14 + $0x84] sm:$0xf] }
 0x389   :  { %v1494_v36 = vpop.f32.mrf.mxu1 }
 0x38a   :  { %v1493_v37 = vadd.f32 %v1492_v29, %v1480_v44  ;;  %v3276_v29 = vld [vmem:[#allocation14 + $0x24] sm:$0xf]  ;;  %v2970_v44 = vld [vmem:[#allocation14 + $0x88] sm:$0xf0] }
 0x38b   :  { %v2925_v32 = vor.u32 %v3276_v29, %v2922_v31  ;;  %v2973_v36 = vor.u32 %v3288_v35, %v2970_v44 }
 0x38c   :  { %v1497_v46 = vmul.f32 0.01, %v1493_v37 }
 0x38d   :  { %v1453_v40 = vpop.f32.mrf.mxu2  ;;  %1979 = vmatpush.bf16.msrb.mxu0 %v2925_v32  ;;  %1994 = vmatpush.bf16.msrb.mxu1 %v2973_v36  ;;  %v1786_v32 = vperm.slane %v3830_v49, 7 }
 0x38e   :  { %v1499_v41 = vmax.f32 %v1493_v37, %v1497_v46  ;;  %v1454_v42 = vadd.f32 %v1453_v40, %v1282_v45  ;;  %v2912_v37 = vld [vmem:[#allocation14 + $0x10] sm:$0xf]  ;;  %v3275_v45 = vld [vmem:[#allocation14 + $0x14] sm:$0xf0]  ;;  %v3274_v46 = vld [vmem:[#allocation14 + $0x14] sm:$0xf] }
 0x38f   :  { %v1468_v43 = vpop.f32.mrf.mxu3  ;;  %v1481_v47 = vpop.f32.mrf.mxu0  ;;  %v2913_v40 = vor.u32 %v3275_v45, %v2912_v37 }
 0x390   :  { %v1501_v48 = vpack.c.bf16 %v1499_v41, %v1499_v41  ;;  %v1467_v50 = vadd.f32 %v1466_v34, %v1454_v42  ;;  %v2969_v34 = vor.u32 %v3289_v38, %v2968_v33  ;;  %v2914_v41 = vld [vmem:[#allocation14 + $0x18] sm:$0xf0]  ;;  %v2904_v43 = vld [vmem:[#allocation14] sm:$0xf]  ;;  %v3273_v47 = vld [vmem:[#allocation14 + $0x4] sm:$0xf0] }
 0x391   :  { %v2917_v42 = vor.u32 %v3274_v46, %v2914_v41  ;;  %1954 = vmatpush.bf16.msrb.mxu2 %v2913_v40 }
 0x392   :  { %v1496_v51 = vmul.f32 0.01, %v1467_v50  ;;  %1717 = vmatmul.bf16.vlgmr.msra.gmra.mxu3 %v1501_v48  ;;  %1743 = vmatmul.bf16.vlgmr.msra.gmra.mxu1 %v1501_v48  ;;  %v3272_v48 = vld [vmem:[#allocation14 + $0x4] sm:$0xf] }
 0x393   :  { %1968 = vmatpush.bf16.msrb.mxu3 %v2969_v34  ;;  %1980 = vmatpush.bf16.msrb.mxu0 %v2917_v42 }
 0x394   :  { %v1498_v52 = vmax.f32 %v1467_v50, %v1496_v51  ;;  %v2905_v50 = vor.u32 %v3273_v47, %v2904_v43  ;;  %v2906_v51 = vld [vmem:[#allocation14 + $0x8] sm:$0xf0]  ;;  %v190_v43 = vld [vmem:[#allocation16 + $0x10] sm:$0xff] }
 0x395   :  { %v1455_v53 = vpop.f32.mrf.mxu2  ;;  %v2038_v47 = vperm.slane %v190_v43, 0 }
 0x396   :  { %v1500_v54 = vpack.c.bf16 %v1498_v52, %v1498_v52  ;;  %v2909_v52 = vor.u32 %v3272_v48, %v2906_v51  ;;  %1955 = vmatpush.bf16.msrb.mxu2 %v2905_v50  ;;  %v3319_v53 = vld [vmem:[%s3903_s13 + $0x78] sm:$0xff] }
 0x397   :  { %2148 = vmatpush.bf16.msra.mxu3 %v3319_v53 }
 0x398   :  { %1704 = vmatmul.bf16.vlgmr.msra.gmra.mxu2 %v1500_v54  ;;  %1730 = vmatmul.bf16.vlgmr.msra.gmra.mxu0 %v1500_v54  ;;  %v3311_v54 = vld [vmem:[%s3903_s13 + $0x38] sm:$0xff]  ;;  %s3601_s13 = smov [#allocation17]  }
 0x399   :  { %1981 = vmatpush.bf16.msrb.mxu0 %v2909_v52  ;;  %s2168_s23 = sshll.u32 %s3601_s13, 4  ;;  %s2169_s23 = int_to_ptr.vmem [resolvable:$true] %s2168_s23 }
 0x39a   :  { %2135 = vmatpush.bf16.msra.mxu2 %v3311_v54 }
 0x39b   :  { %2149 = vmatpush.bf16.msra.mxu3 %v3318_v55 }
 0x39e   :  { %2136 = vmatpush.bf16.msra.mxu2 %v3310_v56 }
 0x39f   :  { %2150 = vmatpush.bf16.msra.mxu3 %v3317_v57 }
 0x3a2   :  { %2137 = vmatpush.bf16.msra.mxu2 %v3309_v15 }
 0x3a3   :  { %2151 = vmatpush.bf16.msra.mxu3 %v3316_v59 }
 0x3a6   :  { %2138 = vmatpush.bf16.msra.mxu2 %v3308_v17 }
 0x3a7   :  { %2152 = vmatpush.bf16.msra.mxu3 %v3315_v16 }
 0x3aa   :  { %2139 = vmatpush.bf16.msra.mxu2 %v3307_v19 }
 0x3ab   :  { %2153 = vmatpush.bf16.msra.mxu3 %v3314_v18 }
 0x3ae   :  { %2140 = vmatpush.bf16.msra.mxu2 %v3306_v21 }
 0x3af   :  { %2154 = vmatpush.bf16.msra.mxu3 %v3313_v20 }
 0x3b2   :  { %2141 = vmatpush.bf16.msra.mxu2 %v3305_v23 }
 0x3b3   :  { %2155 = vmatpush.bf16.msra.mxu3 %v3312_v22 }
 0x3b6   :  { %2142 = vmatpush.bf16.msra.mxu2 %v3304_v24 }
 0x40f   :  { %v1744_v58 = vpop.f32.mrf.mxu1 }
 0x415   :  { %v1718_v61 = vpop.f32.mrf.mxu3  ;;  %v1731_v62 = vpop.f32.mrf.mxu0 }
 0x416   :  { %v1732_v63 = vadd.f32 %v1731_v62, %v1535_v60 }
 0x417   :  { %v1746_v1 = vpop.f32.mrf.mxu1 }
 0x418   :  { %v1745_v2 = vadd.f32 %v1744_v58, %v1732_v63 }
 0x41a   :  { %v1749_v4 = vmul.f32 0.01, %v1745_v2 }
 0x41b   :  { %v1705_v6 = vpop.f32.mrf.mxu2 }
 0x41c   :  { %v1751_v5 = vmax.f32 %v1745_v2, %v1749_v4  ;;  %v1706_v7 = vadd.f32 %v1705_v6, %v1534_v3 }
 0x41d   :  { %v1720_v8 = vpop.f32.mrf.mxu3  ;;  %v1733_v9 = vpop.f32.mrf.mxu0 }
 0x41e   :  { %v1753_v0 = vpack.c.bf16 %v1751_v5, %v1751_v5  ;;  %v1719_v10 = vadd.f32 %v1718_v61, %v1706_v7 }
 0x420   :  { %v1748_v11 = vmul.f32 0.01, %v1719_v10  ;;  %1969 = vmatmul.bf16.vlgmr.msrb.gmra.mxu3 %v1753_v0  ;;  %1995 = vmatmul.bf16.vlgmr.msrb.gmra.mxu1 %v1753_v0 }
 0x422   :  { %v1750_v12 = vmax.f32 %v1719_v10, %v1748_v11 }
 0x423   :  { %v1707_v13 = vpop.f32.mrf.mxu2 }
 0x424   :  { %v1752_v14 = vpack.c.bf16 %v1750_v12, %v1750_v12 }
 0x426   :  { %1956 = vmatmul.bf16.vlgmr.msrb.gmra.mxu2 %v1752_v14  ;;  %1982 = vmatmul.bf16.vlgmr.msrb.gmra.mxu0 %v1752_v14 }
 0x49d   :  { %v1996_v25 = vpop.f32.mrf.mxu1 }
 0x4a3   :  { %v1970_v27 = vpop.f32.mrf.mxu3  ;;  %v1983_v28 = vpop.f32.mrf.mxu0 }
 0x4a4   :  { %v1984_v29 = vadd.f32 %v1983_v28, %v1787_v26 }
 0x4a5   :  { %v1998_v30 = vpop.f32.mrf.mxu1 }
 0x4a6   :  { %v1997_v31 = vadd.f32 %v1996_v25, %v1984_v29 }
 0x4a8   :  { %v2001_v33 = vmul.f32 0.01, %v1997_v31 }
 0x4a9   :  { %v1957_v38 = vpop.f32.mrf.mxu2 }
 0x4aa   :  { %v2003_v34 = vmax.f32 %v1997_v31, %v2001_v33  ;;  %v1958_v35 = vadd.f32 %v1957_v38, %v1786_v32 }
 0x4ab   :  { %v1972_v44 = vpop.f32.mrf.mxu3  ;;  %v1985_v36 = vpop.f32.mrf.mxu0 }
 0x4ac   :  { %v2005_v37 = vpack.c.bf16 %v2003_v34, %v2003_v34  ;;  %v1971_v45 = vadd.f32 %v1970_v27, %v1958_v35 }
 0x4ae   :  { %v2000_v46 = vmul.f32 0.01, %v1971_v45  ;;  %2156 = vmatmul.bf16.vlgmr.msra.gmra.mxu3 %v2005_v37 }
 0x4b0   :  { %v2002_v40 = vmax.f32 %v1971_v45, %v2000_v46 }
 0x4b1   :  { %v1959_v41 = vpop.f32.mrf.mxu2 }
 0x4b2   :  { %v2004_v39 = vpack.c.bf16 %v2002_v40, %v2002_v40 }
 0x4b4   :  { %2143 = vmatmul.bf16.vlgmr.msra.gmra.mxu2 %v2004_v39 }
 0x531   :  { %v2157_v42 = vpop.f32.mrf.mxu3 }
 0x537   :  { %v2144_v48 = vpop.f32.mrf.mxu2 }
 0x538   :  { %v2145_v50 = vadd.f32 %v2144_v48, %v2038_v47 }
 0x539   :  { %v2159_v49 = vpop.f32.mrf.mxu3 }
 0x53a   :  { %v2158_v51 = vadd.f32 %v2157_v42, %v2145_v50 }
 0x53c   :  { %v2161_v52 = vpack.c.bf16 %v2158_v51, %v2158_v51 }
 0x53e   :  { %2162 = vst [vmem:[#allocation17] sm:$0x1] %v2161_v52 }
 0x53f   :  { %v2146_v53 = vpop.f32.mrf.mxu2  ;;  %2173 = dma.vmem_to_hbm [thread:$0]  %s2169_s23, 16, %s2171_s12, [#allocation4]  }
 0x540   :  { %3586 = dma.done.wait [#allocation4], 16  }
 0x541   :  { %3587 = vsyncadd [#allocation4], 4294967280 }
 0x542   :  { %2178 = vsyncpa [#allocation3], 1 }
 0x543   :  { %2179 = vsyncpa [#allocation6], 1 }
 0x544   :  { %2180 = vsyncpa [#allocation9], 1 }
 0x545   :  { %2181 = vsyncpa [#allocation12], 1 }
 0x546   :  { %2182 = vsyncpa [#allocation15], 1 }
 0x547   :  { %2183 = vsyncpa [#allocation4], 1 }

</bundles_post_ra>
